<compile_context>
chip_gen: v5e
topology: v5e:2x2
jax: 0.10.0
libtpu: 0.0.40
codegen_flags: <defaults>
</compile_context>

<pallas_src>
import functools

import jax
import jax.numpy as jnp
from jax.experimental import pallas as pl
from jax.experimental.pallas import tpu as pltpu


_VMEM_LIMIT = 32 * 1024 * 1024  # well under v7x's 64 MiB; plenty for this config


def _round_up(x, m):
    return ((x + m - 1) // m) * m


def _ln(x, g, b, eps):
    """LayerNorm over the last axis.  x: (rows, H) f32, g/b: (1, H) f32."""
    mean = jnp.mean(x, axis=-1, keepdims=True)
    cen = x - mean
    var = jnp.mean(cen * cen, axis=-1, keepdims=True)
    return cen * jax.lax.rsqrt(var + eps) * g + b


def _gelu(x):
    # TODO(synk): HF BertIntermediate uses exact erf GELU; the tanh approximation is
    # kept here for a guaranteed Mosaic lowering (~1e-3 activation error).
    c = 0.7978845608028654  # sqrt(2/pi)
    return 0.5 * x * (1.0 + jnp.tanh(c * (x + 0.044715 * x * x * x)))


# ---------------------------------------------------------------------------
# Fused encoder + classifier kernel
# ---------------------------------------------------------------------------

def _encoder_kernel(emb_ref, mask_ref, eg_ref, eb_ref,
                    wqkv_ref, bqkv_ref, wo_ref, bo_ref, g1_ref, b1_ref,
                    w1_ref, bf1_ref, w2_ref, bf2_ref, g2_ref, b2_ref,
                    fcw_ref, fcb_ref,
                    logits_ref,
                    h_ref, qkv_ref, ctx_ref,
                    *, nh, dh, eps):
    l = pl.program_id(1)
    H = nh * dh

    # Layer 0 for this batch element: init the hidden-state carry with embedding LN.
    @pl.when(l == 0)
    def _():
        x = emb_ref[0].astype(jnp.float32)                            # (S, H)
        h_ref[...] = _ln(x, eg_ref[...], eb_ref[...], eps).astype(h_ref.dtype)

    h = h_ref[...]                                                    # (S, H) bf16

    # ---- fused QKV projection (1/sqrt(DH) is folded into the Q weights) ----
    qkv = jnp.dot(h, wqkv_ref[0], preferred_element_type=jnp.float32) + bqkv_ref[0]
    qkv_ref[...] = qkv.astype(qkv_ref.dtype)                          # (S, 3H) bf16

    # ---- multi-head attention: per-head, direct stores into ctx scratch ----
    mask = mask_ref[0]                                                # (1, S) f32 additive
    for hd in range(nh):                                              # static unroll
        q = qkv_ref[:, hd * dh:(hd + 1) * dh]                         # (S, DH) bf16
        k = qkv_ref[:, H + hd * dh:H + (hd + 1) * dh]
        v = qkv_ref[:, 2 * H + hd * dh:2 * H + (hd + 1) * dh]
        s = jax.lax.dot_general(q, k, (((1,), (1,)), ((), ())),
                                preferred_element_type=jnp.float32)   # (S, S)
        s = s + mask
        s = s - jnp.max(s, axis=-1, keepdims=True)
        p = jnp.exp(s)
        p = p / jnp.sum(p, axis=-1, keepdims=True)                    # exact softmax
        ctx_ref[:, hd * dh:(hd + 1) * dh] = jnp.dot(
            p.astype(v.dtype), v, preferred_element_type=jnp.float32
        ).astype(ctx_ref.dtype)
    # TODO(synk): at S=512/NH=12 replace this whole-(S,3H) block + head unroll with a
    # flash-style KV-block grid (online softmax) to bound VMEM on v7x.

    # ---- attention output projection + residual + LayerNorm ----
    attn = jnp.dot(ctx_ref[...], wo_ref[0],
                   preferred_element_type=jnp.float32) + bo_ref[0]
    h1 = _ln(attn + h.astype(jnp.float32), g1_ref[0], b1_ref[0], eps)  # (S, H) f32
    h1_bf = h1.astype(jnp.bfloat16)

    # ---- FFN: GELU fused after matmul 1, residual + LN fused after matmul 2 ----
    f = jnp.dot(h1_bf, w1_ref[0], preferred_element_type=jnp.float32) + bf1_ref[0]
    f = _gelu(f).astype(jnp.bfloat16)                                  # (S, FF)
    ff = jnp.dot(f, w2_ref[0], preferred_element_type=jnp.float32) + bf2_ref[0]
    h2 = _ln(ff + h1, g2_ref[0], b2_ref[0], eps)                       # (S, H) f32

    h_ref[...] = h2.astype(h_ref.dtype)                                # carry -> next layer

    # ---- last layer: classifier head on the CLS token (lane-padded classes) ----
    @pl.when(l == pl.num_programs(1) - 1)
    def _():
        logits = jnp.dot(h2.astype(jnp.bfloat16), fcw_ref[...],
                         preferred_element_type=jnp.float32) + fcb_ref[...]
        logits_ref[0] = logits[0:1, :]                                 # CLS row only


def bert_encoder_and_head(cparams, emb_bf16, mask_add, cfg):
    B, S, H, NH, DH, FF, L = (cfg["B"], cfg["S"], cfg["H"], cfg["NH"],
                              cfg["DH"], cfg["FF"], cfg["L"])
    Cp = cparams["fc_w"].shape[1]
    H3 = 3 * H

    def per_batch(b, l):
        return (b, 0, 0)

    def per_layer(b, l):
        return (l, 0, 0)

    def const2(b, l):
        return (0, 0)

    logits = pl.pallas_call(
        functools.partial(_encoder_kernel, nh=NH, dh=DH, eps=1e-12),
        out_shape=jax.ShapeDtypeStruct((B, 1, Cp), jnp.float32),
        grid=(B, L),
        in_specs=[
            pl.BlockSpec((1, S, H), per_batch),      # summed embeddings (bf16)
            pl.BlockSpec((1, 1, S), per_batch),      # additive attention mask
            pl.BlockSpec((1, H), const2),            # emb LN gamma
            pl.BlockSpec((1, H), const2),            # emb LN beta
            pl.BlockSpec((1, H, H3), per_layer),     # wqkv (stacked over L)
            pl.BlockSpec((1, 1, H3), per_layer),     # bqkv
            pl.BlockSpec((1, H, H), per_layer),      # wo
            pl.BlockSpec((1, 1, H), per_layer),      # bo
            pl.BlockSpec((1, 1, H), per_layer),      # ln1 gamma
            pl.BlockSpec((1, 1, H), per_layer),      # ln1 beta
            pl.BlockSpec((1, H, FF), per_layer),     # w1
            pl.BlockSpec((1, 1, FF), per_layer),     # b1
            pl.BlockSpec((1, FF, H), per_layer),     # w2
            pl.BlockSpec((1, 1, H), per_layer),      # b2
            pl.BlockSpec((1, 1, H), per_layer),      # ln2 gamma
            pl.BlockSpec((1, 1, H), per_layer),      # ln2 beta
            pl.BlockSpec((H, Cp), const2),           # fc_w (class dim padded to 128)
            pl.BlockSpec((1, Cp), const2),           # fc_b
        ],
        out_specs=pl.BlockSpec((1, 1, Cp), per_batch),
        scratch_shapes=[
            pltpu.VMEM((S, H), jnp.bfloat16),        # hidden-state carry across layers
            pltpu.VMEM((S, H3), jnp.bfloat16),       # fused QKV activations
            pltpu.VMEM((S, H), jnp.bfloat16),        # attention context (per-head stores)
        ],
        compiler_params=pltpu.CompilerParams(
            dimension_semantics=("parallel", "arbitrary"),
            vmem_limit_bytes=_VMEM_LIMIT),
    )(emb_bf16, mask_add,
      cparams["emb_ln_g"], cparams["emb_ln_b"],
      cparams["wqkv"], cparams["bqkv"], cparams["wo"], cparams["bo"],
      cparams["ln1_g"], cparams["ln1_b"],
      cparams["w1"], cparams["b1"], cparams["w2"], cparams["b2"],
      cparams["ln2_g"], cparams["ln2_b"],
      cparams["fc_w"], cparams["fc_b"])
    return logits[:, 0, :]                            # (B, Cp)


# ---------------------------------------------------------------------------
# Model wrapper (embedding gathers + scalar loss stay in JAX)
# ---------------------------------------------------------------------------

def bert_for_classification(cparams, input_ids, attention_mask, labels, cfg):
    # NOTE: the PyTorch module reads hidden_states[-1][:, 0, :] (pre-pooler CLS
    # vector), so the BERT pooler is not needed for this forward pass.
    B, S, H, C = cfg["B"], cfg["S"], cfg["H"], cfg["C"]
    pos_ids = jnp.arange(S, dtype=jnp.int32)
    token_type = jnp.zeros((B, S), dtype=jnp.int32)
    emb = (cparams["word_emb"][input_ids]
           + cparams["pos_emb"][pos_ids][None, :, :]
           + cparams["type_emb"][token_type])
    emb = emb.astype(jnp.bfloat16)                    # halves the kernel's activation DMA
    mask_add = (1.0 - attention_mask.astype(jnp.float32))[:, None, :] * -10000.0  # (B,1,S)

    logits_p = bert_encoder_and_head(cparams, emb, mask_add, cfg)   # (B, Cp) f32
    logits = logits_p[:, :C]

    # Mean cross-entropy on the tiny (B, C) logits: plain JAX (a separate kernel here
    # is pure dispatch overhead; padded class lanes are sliced away before softmax).
    logp = jax.nn.log_softmax(logits.astype(jnp.float32), axis=-1)
    nll = -jnp.take_along_axis(logp, labels[:, None], axis=1)[:, 0]
    return {"logits": logits, "loss": jnp.mean(nll)}


def init_params(key, cfg):
    """Plain f32 parameters mirroring the PyTorch module."""
    H, FF, V, P, C, L = cfg["H"], cfg["FF"], cfg["V"], cfg["P"], cfg["C"], cfg["L"]
    keys = iter(jax.random.split(key, 8 + 16 * L))

    def w(shape, scale=0.02):
        return jax.random.normal(next(keys), shape, jnp.float32) * scale

    params = {
        "word_emb": w((V, H)),
        "pos_emb": w((P, H)),
        "type_emb": w((2, H)),
        "emb_ln_g": jnp.ones((H,), jnp.float32),
        "emb_ln_b": jnp.zeros((H,), jnp.float32),
        "fc_w": w((H, C)),
        "fc_b": jnp.zeros((C,), jnp.float32),
        "layers": [],
    }
    for _ in range(L):
        params["layers"].append({
            "wq": w((H, H)), "bq": jnp.zeros((H,), jnp.float32),
            "wk": w((H, H)), "bk": jnp.zeros((H,), jnp.float32),
            "wv": w((H, H)), "bv": jnp.zeros((H,), jnp.float32),
            "wo": w((H, H)), "bo": jnp.zeros((H,), jnp.float32),
            "ln1_g": jnp.ones((H,), jnp.float32), "ln1_b": jnp.zeros((H,), jnp.float32),
            "w1": w((H, FF)), "b1": jnp.zeros((FF,), jnp.float32),
            "w2": w((FF, H)), "b2": jnp.zeros((H,), jnp.float32),
            "ln2_g": jnp.ones((H,), jnp.float32), "ln2_b": jnp.zeros((H,), jnp.float32),
        })
    return params


def prepare_params(params, cfg):
    """Stack per-layer weights along a leading L axis (stacked-layer grid), fold
    1/sqrt(DH) into Q, cast matmul weights to bf16, lane-pad the classifier to 128."""
    H, DH, C, FF = cfg["H"], cfg["DH"], cfg["C"], cfg["FF"]
    scale = 1.0 / (DH ** 0.5)
    Cp = _round_up(max(C, 128), 128)

    def stack(fn):
        return jnp.stack([fn(p) for p in params["layers"]], axis=0)

    return {
        "word_emb": params["word_emb"],
        "pos_emb": params["pos_emb"],
        "type_emb": params["type_emb"],
        "emb_ln_g": params["emb_ln_g"].reshape(1, H),
        "emb_ln_b": params["emb_ln_b"].reshape(1, H),
        "wqkv": stack(lambda p: jnp.concatenate(
            [p["wq"] * scale, p["wk"], p["wv"]], axis=1).astype(jnp.bfloat16)),
        "bqkv": stack(lambda p: jnp.concatenate(
            [p["bq"] * scale, p["bk"], p["bv"]]).reshape(1, 3 * H)),
        "wo": stack(lambda p: p["wo"].astype(jnp.bfloat16)),
        "bo": stack(lambda p: p["bo"].reshape(1, H)),
        "ln1_g": stack(lambda p: p["ln1_g"].reshape(1, H)),
        "ln1_b": stack(lambda p: p["ln1_b"].reshape(1, H)),
        "w1": stack(lambda p: p["w1"].astype(jnp.bfloat16)),
        "b1": stack(lambda p: p["b1"].reshape(1, FF)),
        "w2": stack(lambda p: p["w2"].astype(jnp.bfloat16)),
        "b2": stack(lambda p: p["b2"].reshape(1, H)),
        "ln2_g": stack(lambda p: p["ln2_g"].reshape(1, H)),
        "ln2_b": stack(lambda p: p["ln2_b"].reshape(1, H)),
        "fc_w": jnp.zeros((H, Cp), jnp.float32).at[:, :C].set(
            params["fc_w"]).astype(jnp.bfloat16),
        "fc_b": jnp.zeros((1, Cp), jnp.float32).at[0, :C].set(params["fc_b"]),
    }


if __name__ == "__main__":
    # Small synthetic BERT config (bert-base is H=768, L=12, NH=12; scaled down here).
    cfg = dict(B=2, S=16, H=128, NH=4, DH=32, FF=256, L=2, V=64, P=32, C=7)

    params = init_params(jax.random.PRNGKey(0), cfg)
    cparams = prepare_params(params, cfg)

    k1, k2 = jax.random.split(jax.random.PRNGKey(0))
    input_ids = jax.random.randint(k1, (cfg["B"], cfg["S"]), 0, cfg["V"], dtype=jnp.int32)
    attention_mask = jnp.ones((cfg["B"], cfg["S"]), jnp.int32).at[1, 12:].set(0)
    labels = jax.random.randint(k2, (cfg["B"],), 0, cfg["C"], dtype=jnp.int32)

    forward = jax.jit(functools.partial(bert_for_classification, cfg=cfg))
    out = forward(cparams, input_ids, attention_mask, labels)
    out = jax.block_until_ready(out)

    assert out["logits"].shape == (cfg["B"], cfg["C"])
    assert out["loss"].shape == ()
    assert bool(jnp.isfinite(out["loss"]))
    print("KERNEL_OK")
</pallas_src>

<mosaic_0001>
module attributes {stable_mosaic.version = 11 : i64} {
  func.func @_encoder_kernel(%arg0: i32, %arg1: i32, %arg2: memref<1x16x128xbf16, #tpu.memory_space<vmem>>, %arg3: memref<1x1x16xf32, #tpu.memory_space<vmem>>, %arg4: memref<1x128xf32, #tpu.memory_space<vmem>>, %arg5: memref<1x128xf32, #tpu.memory_space<vmem>>, %arg6: memref<1x128x384xbf16, #tpu.memory_space<vmem>>, %arg7: memref<1x1x384xf32, #tpu.memory_space<vmem>>, %arg8: memref<1x128x128xbf16, #tpu.memory_space<vmem>>, %arg9: memref<1x1x128xf32, #tpu.memory_space<vmem>>, %arg10: memref<1x1x128xf32, #tpu.memory_space<vmem>>, %arg11: memref<1x1x128xf32, #tpu.memory_space<vmem>>, %arg12: memref<1x128x256xbf16, #tpu.memory_space<vmem>>, %arg13: memref<1x1x256xf32, #tpu.memory_space<vmem>>, %arg14: memref<1x256x128xbf16, #tpu.memory_space<vmem>>, %arg15: memref<1x1x128xf32, #tpu.memory_space<vmem>>, %arg16: memref<1x1x128xf32, #tpu.memory_space<vmem>>, %arg17: memref<1x1x128xf32, #tpu.memory_space<vmem>>, %arg18: memref<128x128xbf16, #tpu.memory_space<vmem>>, %arg19: memref<1x128xf32, #tpu.memory_space<vmem>>, %arg20: memref<1x1x128xf32, #tpu.memory_space<vmem>>, %arg21: memref<16x128xbf16, #tpu.memory_space<vmem>>, %arg22: memref<16x384xbf16, #tpu.memory_space<vmem>>, %arg23: memref<16x128xbf16, #tpu.memory_space<vmem>>) attributes {dimension_semantics = [#tpu.dimension_semantics<parallel>, #tpu.dimension_semantics<arbitrary>], iteration_bounds = array<i64: 2, 2>, scalar_prefetch = 0 : i64, scratch_operands = 3 : i64, tpu.core_type = #tpu.core_type<tc>, window_params = [{transform_indices = @transform_0, window_bounds = array<i64: 1, 16, 128>}, {transform_indices = @transform_1, window_bounds = array<i64: 1, 1, 16>}, {pipeline_mode = #tpu.pipeline_mode<synchronous>, transform_indices = @transform_2, window_bounds = array<i64: 1, 128>}, {pipeline_mode = #tpu.pipeline_mode<synchronous>, transform_indices = @transform_3, window_bounds = array<i64: 1, 128>}, {transform_indices = @transform_4, window_bounds = array<i64: 1, 128, 384>}, {transform_indices = @transform_5, window_bounds = array<i64: 1, 1, 384>}, {transform_indices = @transform_6, window_bounds = array<i64: 1, 128, 128>}, {transform_indices = @transform_7, window_bounds = array<i64: 1, 1, 128>}, {transform_indices = @transform_8, window_bounds = array<i64: 1, 1, 128>}, {transform_indices = @transform_9, window_bounds = array<i64: 1, 1, 128>}, {transform_indices = @transform_10, window_bounds = array<i64: 1, 128, 256>}, {transform_indices = @transform_11, window_bounds = array<i64: 1, 1, 256>}, {transform_indices = @transform_12, window_bounds = array<i64: 1, 256, 128>}, {transform_indices = @transform_13, window_bounds = array<i64: 1, 1, 128>}, {transform_indices = @transform_14, window_bounds = array<i64: 1, 1, 128>}, {transform_indices = @transform_15, window_bounds = array<i64: 1, 1, 128>}, {pipeline_mode = #tpu.pipeline_mode<synchronous>, transform_indices = @transform_16, window_bounds = array<i64: 128, 128>}, {pipeline_mode = #tpu.pipeline_mode<synchronous>, transform_indices = @transform_17, window_bounds = array<i64: 1, 128>}, {transform_indices = @transform_18, window_bounds = array<i64: 1, 1, 128>}]} {
    %c0_i32 = arith.constant 0 : i32
    %0 = arith.cmpi eq, %arg1, %c0_i32 : i32
    %1 = arith.extui %0 : i1 to i32
    %c0_i32_0 = arith.constant 0 : i32
    %2 = arith.cmpi ne, %1, %c0_i32_0 : i32
    scf.if %2 {
      %c0_102 = arith.constant 0 : index
      %c0_103 = arith.constant 0 : index
      %c0_104 = arith.constant 0 : index
      %184 = vector.load %arg2[%c0_102, %c0_103, %c0_104] : memref<1x16x128xbf16, #tpu.memory_space<vmem>>, vector<1x16x128xbf16>
      %185 = vector.shape_cast %184 : vector<1x16x128xbf16> to vector<16x128xbf16>
      %186 = arith.extf %185 : vector<16x128xbf16> to vector<16x128xf32>
      %c0_105 = arith.constant 0 : index
      %c0_106 = arith.constant 0 : index
      %187 = vector.load %arg4[%c0_105, %c0_106] : memref<1x128xf32, #tpu.memory_space<vmem>>, vector<1x128xf32>
      %c0_107 = arith.constant 0 : index
      %c0_108 = arith.constant 0 : index
      %188 = vector.load %arg5[%c0_107, %c0_108] : memref<1x128xf32, #tpu.memory_space<vmem>>, vector<1x128xf32>
      %cst_109 = arith.constant dense<0.000000e+00> : vector<16xf32>
      %189 = vector.multi_reduction <add>, %186, %cst_109 [1] : vector<16x128xf32> to vector<16xf32>
      %190 = vector.shape_cast %189 : vector<16xf32> to vector<16x1xf32>
      %cst_110 = arith.constant 1.280000e+02 : f32
      %191 = vector.broadcast %cst_110 : f32 to vector<16x1xf32>
      %192 = arith.divf %190, %191 : vector<16x1xf32>
      %193 = vector.broadcast %192 : vector<16x1xf32> to vector<16x128xf32>
      %194 = arith.subf %186, %193 : vector<16x128xf32>
      %195 = arith.mulf %194, %194 : vector<16x128xf32>
      %cst_111 = arith.constant dense<0.000000e+00> : vector<16xf32>
      %196 = vector.multi_reduction <add>, %195, %cst_111 [1] : vector<16x128xf32> to vector<16xf32>
      %197 = vector.shape_cast %196 : vector<16xf32> to vector<16x1xf32>
      %cst_112 = arith.constant 1.280000e+02 : f32
      %198 = vector.broadcast %cst_112 : f32 to vector<16x1xf32>
      %199 = arith.divf %197, %198 : vector<16x1xf32>
      %cst_113 = arith.constant 9.99999996E-13 : f32
      %200 = vector.broadcast %cst_113 : f32 to vector<16x1xf32>
      %201 = arith.addf %199, %200 : vector<16x1xf32>
      %202 = math.rsqrt %201 : vector<16x1xf32>
      %203 = vector.broadcast %202 : vector<16x1xf32> to vector<16x128xf32>
      %204 = arith.mulf %194, %203 : vector<16x128xf32>
      %205 = vector.broadcast %187 : vector<1x128xf32> to vector<16x128xf32>
      %206 = arith.mulf %204, %205 : vector<16x128xf32>
      %207 = vector.broadcast %188 : vector<1x128xf32> to vector<16x128xf32>
      %208 = arith.addf %206, %207 : vector<16x128xf32>
      %209 = arith.truncf %208 : vector<16x128xf32> to vector<16x128xbf16>
      %c0_114 = arith.constant 0 : index
      %c0_115 = arith.constant 0 : index
      %210 = vector.load %arg21[%c0_114, %c0_115] : memref<16x128xbf16, #tpu.memory_space<vmem>>, vector<16x128xbf16>
      tpu.vector_store %arg21[%c0_114, %c0_115], %209 {strides = array<i32>} : memref<16x128xbf16, #tpu.memory_space<vmem>>, vector<16x128xbf16>,
    } else {
    }
    %c0 = arith.constant 0 : index
    %c0_1 = arith.constant 0 : index
    %3 = vector.load %arg21[%c0, %c0_1] : memref<16x128xbf16, #tpu.memory_space<vmem>>, vector<16x128xbf16>
    %c0_2 = arith.constant 0 : index
    %c0_3 = arith.constant 0 : index
    %c0_4 = arith.constant 0 : index
    %4 = vector.load %arg6[%c0_2, %c0_3, %c0_4] : memref<1x128x384xbf16, #tpu.memory_space<vmem>>, vector<1x128x384xbf16>
    %5 = vector.shape_cast %4 : vector<1x128x384xbf16> to vector<128x384xbf16>
    %cst = arith.constant dense<0.000000e+00> : vector<16x384xf32>
    %6 = tpu.matmul %3, %5, %cst {dimension_numbers = #tpu.dot_dimension_numbers<[1], [0], [0], [1], [0, 0, 1, 1], [], []>} : vector<16x128xbf16>, vector<128x384xbf16>, vector<16x384xf32> -> vector<16x384xf32>
    %c0_5 = arith.constant 0 : index
    %c0_6 = arith.constant 0 : index
    %c0_7 = arith.constant 0 : index
    %7 = vector.load %arg7[%c0_5, %c0_6, %c0_7] : memref<1x1x384xf32, #tpu.memory_space<vmem>>, vector<1x1x384xf32>
    %8 = vector.shape_cast %7 : vector<1x1x384xf32> to vector<1x384xf32>
    %9 = vector.broadcast %8 : vector<1x384xf32> to vector<16x384xf32>
    %10 = arith.addf %6, %9 : vector<16x384xf32>
    %11 = arith.truncf %10 : vector<16x384xf32> to vector<16x384xbf16>
    %c0_8 = arith.constant 0 : index
    %c0_9 = arith.constant 0 : index
    %12 = vector.load %arg22[%c0_8, %c0_9] : memref<16x384xbf16, #tpu.memory_space<vmem>>, vector<16x384xbf16>
    tpu.vector_store %arg22[%c0_8, %c0_9], %11 {strides = array<i32>} : memref<16x384xbf16, #tpu.memory_space<vmem>>, vector<16x384xbf16>,
    %c0_10 = arith.constant 0 : index
    %c0_11 = arith.constant 0 : index
    %c0_12 = arith.constant 0 : index
    %13 = vector.load %arg3[%c0_10, %c0_11, %c0_12] : memref<1x1x16xf32, #tpu.memory_space<vmem>>, vector<1x1x16xf32>
    %14 = vector.shape_cast %13 : vector<1x1x16xf32> to vector<1x16xf32>
    %c0_13 = arith.constant 0 : index
    %c0_14 = arith.constant 0 : index
    %15 = vector.load %arg22[%c0_13, %c0_14] : memref<16x384xbf16, #tpu.memory_space<vmem>>, vector<16x32xbf16>
    %c0_15 = arith.constant 0 : index
    %c128 = arith.constant 128 : index
    %16 = vector.load %arg22[%c0_15, %c128] : memref<16x384xbf16, #tpu.memory_space<vmem>>, vector<16x32xbf16>
    %c0_16 = arith.constant 0 : index
    %c256 = arith.constant 256 : index
    %17 = vector.load %arg22[%c0_16, %c256] : memref<16x384xbf16, #tpu.memory_space<vmem>>, vector<16x32xbf16>
    %cst_17 = arith.constant dense<0.000000e+00> : vector<16x16xf32>
    %18 = tpu.matmul %15, %16, %cst_17 {dimension_numbers = #tpu.dot_dimension_numbers<[1], [1], [0], [0], [0, 0, 1, 0], [], []>} : vector<16x32xbf16>, vector<16x32xbf16>, vector<16x16xf32> -> vector<16x16xf32>
    %19 = vector.broadcast %14 : vector<1x16xf32> to vector<16x16xf32>
    %20 = arith.addf %18, %19 : vector<16x16xf32>
    %cst_18 = arith.constant dense<0xFF800000> : vector<16xf32>
    %21 = vector.multi_reduction <maximumf>, %20, %cst_18 [1] : vector<16x16xf32> to vector<16xf32>
    %22 = vector.shape_cast %21 : vector<16xf32> to vector<16x1xf32>
    %23 = vector.broadcast %22 : vector<16x1xf32> to vector<16x16xf32>
    %24 = arith.subf %20, %23 : vector<16x16xf32>
    %25 = math.exp %24 : vector<16x16xf32>
    %cst_19 = arith.constant dense<0.000000e+00> : vector<16xf32>
    %26 = vector.multi_reduction <add>, %25, %cst_19 [1] : vector<16x16xf32> to vector<16xf32>
    %27 = vector.shape_cast %26 : vector<16xf32> to vector<16x1xf32>
    %28 = vector.broadcast %27 : vector<16x1xf32> to vector<16x16xf32>
    %29 = arith.divf %25, %28 : vector<16x16xf32>
    %30 = arith.truncf %29 : vector<16x16xf32> to vector<16x16xbf16>
    %cst_20 = arith.constant dense<0.000000e+00> : vector<16x32xf32>
    %31 = tpu.matmul %30, %17, %cst_20 {dimension_numbers = #tpu.dot_dimension_numbers<[1], [0], [0], [1], [0, 0, 1, 1], [], []>} : vector<16x16xbf16>, vector<16x32xbf16>, vector<16x32xf32> -> vector<16x32xf32>
    %32 = arith.truncf %31 : vector<16x32xf32> to vector<16x32xbf16>
    %c0_21 = arith.constant 0 : index
    %c0_22 = arith.constant 0 : index
    %33 = vector.load %arg23[%c0_21, %c0_22] : memref<16x128xbf16, #tpu.memory_space<vmem>>, vector<16x32xbf16>
    tpu.vector_store %arg23[%c0_21, %c0_22], %32 {strides = array<i32>} : memref<16x128xbf16, #tpu.memory_space<vmem>>, vector<16x32xbf16>,
    %c0_23 = arith.constant 0 : index
    %c32 = arith.constant 32 : index
    %34 = vector.load %arg22[%c0_23, %c32] : memref<16x384xbf16, #tpu.memory_space<vmem>>, vector<16x32xbf16>
    %c0_24 = arith.constant 0 : index
    %c160 = arith.constant 160 : index
    %35 = vector.load %arg22[%c0_24, %c160] : memref<16x384xbf16, #tpu.memory_space<vmem>>, vector<16x32xbf16>
    %c0_25 = arith.constant 0 : index
    %c288 = arith.constant 288 : index
    %36 = vector.load %arg22[%c0_25, %c288] : memref<16x384xbf16, #tpu.memory_space<vmem>>, vector<16x32xbf16>
    %cst_26 = arith.constant dense<0.000000e+00> : vector<16x16xf32>
    %37 = tpu.matmul %34, %35, %cst_26 {dimension_numbers = #tpu.dot_dimension_numbers<[1], [1], [0], [0], [0, 0, 1, 0], [], []>} : vector<16x32xbf16>, vector<16x32xbf16>, vector<16x16xf32> -> vector<16x16xf32>
    %38 = vector.broadcast %14 : vector<1x16xf32> to vector<16x16xf32>
    %39 = arith.addf %37, %38 : vector<16x16xf32>
    %cst_27 = arith.constant dense<0xFF800000> : vector<16xf32>
    %40 = vector.multi_reduction <maximumf>, %39, %cst_27 [1] : vector<16x16xf32> to vector<16xf32>
    %41 = vector.shape_cast %40 : vector<16xf32> to vector<16x1xf32>
    %42 = vector.broadcast %41 : vector<16x1xf32> to vector<16x16xf32>
    %43 = arith.subf %39, %42 : vector<16x16xf32>
    %44 = math.exp %43 : vector<16x16xf32>
    %cst_28 = arith.constant dense<0.000000e+00> : vector<16xf32>
    %45 = vector.multi_reduction <add>, %44, %cst_28 [1] : vector<16x16xf32> to vector<16xf32>
    %46 = vector.shape_cast %45 : vector<16xf32> to vector<16x1xf32>
    %47 = vector.broadcast %46 : vector<16x1xf32> to vector<16x16xf32>
    %48 = arith.divf %44, %47 : vector<16x16xf32>
    %49 = arith.truncf %48 : vector<16x16xf32> to vector<16x16xbf16>
    %cst_29 = arith.constant dense<0.000000e+00> : vector<16x32xf32>
    %50 = tpu.matmul %49, %36, %cst_29 {dimension_numbers = #tpu.dot_dimension_numbers<[1], [0], [0], [1], [0, 0, 1, 1], [], []>} : vector<16x16xbf16>, vector<16x32xbf16>, vector<16x32xf32> -> vector<16x32xf32>
    %51 = arith.truncf %50 : vector<16x32xf32> to vector<16x32xbf16>
    %c0_30 = arith.constant 0 : index
    %c32_31 = arith.constant 32 : index
    %52 = vector.load %arg23[%c0_30, %c32_31] : memref<16x128xbf16, #tpu.memory_space<vmem>>, vector<16x32xbf16>
    tpu.vector_store %arg23[%c0_30, %c32_31], %51 {strides = array<i32>} : memref<16x128xbf16, #tpu.memory_space<vmem>>, vector<16x32xbf16>,
    %c0_32 = arith.constant 0 : index
    %c64 = arith.constant 64 : index
    %53 = vector.load %arg22[%c0_32, %c64] : memref<16x384xbf16, #tpu.memory_space<vmem>>, vector<16x32xbf16>
    %c0_33 = arith.constant 0 : index
    %c192 = arith.constant 192 : index
    %54 = vector.load %arg22[%c0_33, %c192] : memref<16x384xbf16, #tpu.memory_space<vmem>>, vector<16x32xbf16>
    %c0_34 = arith.constant 0 : index
    %c320 = arith.constant 320 : index
    %55 = vector.load %arg22[%c0_34, %c320] : memref<16x384xbf16, #tpu.memory_space<vmem>>, vector<16x32xbf16>
    %cst_35 = arith.constant dense<0.000000e+00> : vector<16x16xf32>
    %56 = tpu.matmul %53, %54, %cst_35 {dimension_numbers = #tpu.dot_dimension_numbers<[1], [1], [0], [0], [0, 0, 1, 0], [], []>} : vector<16x32xbf16>, vector<16x32xbf16>, vector<16x16xf32> -> vector<16x16xf32>
    %57 = vector.broadcast %14 : vector<1x16xf32> to vector<16x16xf32>
    %58 = arith.addf %56, %57 : vector<16x16xf32>
    %cst_36 = arith.constant dense<0xFF800000> : vector<16xf32>
    %59 = vector.multi_reduction <maximumf>, %58, %cst_36 [1] : vector<16x16xf32> to vector<16xf32>
    %60 = vector.shape_cast %59 : vector<16xf32> to vector<16x1xf32>
    %61 = vector.broadcast %60 : vector<16x1xf32> to vector<16x16xf32>
    %62 = arith.subf %58, %61 : vector<16x16xf32>
    %63 = math.exp %62 : vector<16x16xf32>
    %cst_37 = arith.constant dense<0.000000e+00> : vector<16xf32>
    %64 = vector.multi_reduction <add>, %63, %cst_37 [1] : vector<16x16xf32> to vector<16xf32>
    %65 = vector.shape_cast %64 : vector<16xf32> to vector<16x1xf32>
    %66 = vector.broadcast %65 : vector<16x1xf32> to vector<16x16xf32>
    %67 = arith.divf %63, %66 : vector<16x16xf32>
    %68 = arith.truncf %67 : vector<16x16xf32> to vector<16x16xbf16>
    %cst_38 = arith.constant dense<0.000000e+00> : vector<16x32xf32>
    %69 = tpu.matmul %68, %55, %cst_38 {dimension_numbers = #tpu.dot_dimension_numbers<[1], [0], [0], [1], [0, 0, 1, 1], [], []>} : vector<16x16xbf16>, vector<16x32xbf16>, vector<16x32xf32> -> vector<16x32xf32>
    %70 = arith.truncf %69 : vector<16x32xf32> to vector<16x32xbf16>
    %c0_39 = arith.constant 0 : index
    %c64_40 = arith.constant 64 : index
    %71 = vector.load %arg23[%c0_39, %c64_40] : memref<16x128xbf16, #tpu.memory_space<vmem>>, vector<16x32xbf16>
    tpu.vector_store %arg23[%c0_39, %c64_40], %70 {strides = array<i32>} : memref<16x128xbf16, #tpu.memory_space<vmem>>, vector<16x32xbf16>,
    %c0_41 = arith.constant 0 : index
    %c96 = arith.constant 96 : index
    %72 = vector.load %arg22[%c0_41, %c96] : memref<16x384xbf16, #tpu.memory_space<vmem>>, vector<16x32xbf16>
    %c0_42 = arith.constant 0 : index
    %c224 = arith.constant 224 : index
    %73 = vector.load %arg22[%c0_42, %c224] : memref<16x384xbf16, #tpu.memory_space<vmem>>, vector<16x32xbf16>
    %c0_43 = arith.constant 0 : index
    %c352 = arith.constant 352 : index
    %74 = vector.load %arg22[%c0_43, %c352] : memref<16x384xbf16, #tpu.memory_space<vmem>>, vector<16x32xbf16>
    %cst_44 = arith.constant dense<0.000000e+00> : vector<16x16xf32>
    %75 = tpu.matmul %72, %73, %cst_44 {dimension_numbers = #tpu.dot_dimension_numbers<[1], [1], [0], [0], [0, 0, 1, 0], [], []>} : vector<16x32xbf16>, vector<16x32xbf16>, vector<16x16xf32> -> vector<16x16xf32>
    %76 = vector.broadcast %14 : vector<1x16xf32> to vector<16x16xf32>
    %77 = arith.addf %75, %76 : vector<16x16xf32>
    %cst_45 = arith.constant dense<0xFF800000> : vector<16xf32>
    %78 = vector.multi_reduction <maximumf>, %77, %cst_45 [1] : vector<16x16xf32> to vector<16xf32>
    %79 = vector.shape_cast %78 : vector<16xf32> to vector<16x1xf32>
    %80 = vector.broadcast %79 : vector<16x1xf32> to vector<16x16xf32>
    %81 = arith.subf %77, %80 : vector<16x16xf32>
    %82 = math.exp %81 : vector<16x16xf32>
    %cst_46 = arith.constant dense<0.000000e+00> : vector<16xf32>
    %83 = vector.multi_reduction <add>, %82, %cst_46 [1] : vector<16x16xf32> to vector<16xf32>
    %84 = vector.shape_cast %83 : vector<16xf32> to vector<16x1xf32>
    %85 = vector.broadcast %84 : vector<16x1xf32> to vector<16x16xf32>
    %86 = arith.divf %82, %85 : vector<16x16xf32>
    %87 = arith.truncf %86 : vector<16x16xf32> to vector<16x16xbf16>
    %cst_47 = arith.constant dense<0.000000e+00> : vector<16x32xf32>
    %88 = tpu.matmul %87, %74, %cst_47 {dimension_numbers = #tpu.dot_dimension_numbers<[1], [0], [0], [1], [0, 0, 1, 1], [], []>} : vector<16x16xbf16>, vector<16x32xbf16>, vector<16x32xf32> -> vector<16x32xf32>
    %89 = arith.truncf %88 : vector<16x32xf32> to vector<16x32xbf16>
    %c0_48 = arith.constant 0 : index
    %c96_49 = arith.constant 96 : index
    %90 = vector.load %arg23[%c0_48, %c96_49] : memref<16x128xbf16, #tpu.memory_space<vmem>>, vector<16x32xbf16>
    tpu.vector_store %arg23[%c0_48, %c96_49], %89 {strides = array<i32>} : memref<16x128xbf16, #tpu.memory_space<vmem>>, vector<16x32xbf16>,
    %c0_50 = arith.constant 0 : index
    %c0_51 = arith.constant 0 : index
    %91 = vector.load %arg23[%c0_50, %c0_51] : memref<16x128xbf16, #tpu.memory_space<vmem>>, vector<16x128xbf16>
    %c0_52 = arith.constant 0 : index
    %c0_53 = arith.constant 0 : index
    %c0_54 = arith.constant 0 : index
    %92 = vector.load %arg8[%c0_52, %c0_53, %c0_54] : memref<1x128x128xbf16, #tpu.memory_space<vmem>>, vector<1x128x128xbf16>
    %93 = vector.shape_cast %92 : vector<1x128x128xbf16> to vector<128x128xbf16>
    %cst_55 = arith.constant dense<0.000000e+00> : vector<16x128xf32>
    %94 = tpu.matmul %91, %93, %cst_55 {dimension_numbers = #tpu.dot_dimension_numbers<[1], [0], [0], [1], [0, 0, 1, 1], [], []>} : vector<16x128xbf16>, vector<128x128xbf16>, vector<16x128xf32> -> vector<16x128xf32>
    %c0_56 = arith.constant 0 : index
    %c0_57 = arith.constant 0 : index
    %c0_58 = arith.constant 0 : index
    %95 = vector.load %arg9[%c0_56, %c0_57, %c0_58] : memref<1x1x128xf32, #tpu.memory_space<vmem>>, vector<1x1x128xf32>
    %96 = vector.shape_cast %95 : vector<1x1x128xf32> to vector<1x128xf32>
    %97 = vector.broadcast %96 : vector<1x128xf32> to vector<16x128xf32>
    %98 = arith.addf %94, %97 : vector<16x128xf32>
    %99 = arith.extf %3 : vector<16x128xbf16> to vector<16x128xf32>
    %100 = arith.addf %98, %99 : vector<16x128xf32>
    %c0_59 = arith.constant 0 : index
    %c0_60 = arith.constant 0 : index
    %c0_61 = arith.constant 0 : index
    %101 = vector.load %arg10[%c0_59, %c0_60, %c0_61] : memref<1x1x128xf32, #tpu.memory_space<vmem>>, vector<1x1x128xf32>
    %102 = vector.shape_cast %101 : vector<1x1x128xf32> to vector<1x128xf32>
    %c0_62 = arith.constant 0 : index
    %c0_63 = arith.constant 0 : index
    %c0_64 = arith.constant 0 : index
    %103 = vector.load %arg11[%c0_62, %c0_63, %c0_64] : memref<1x1x128xf32, #tpu.memory_space<vmem>>, vector<1x1x128xf32>
    %104 = vector.shape_cast %103 : vector<1x1x128xf32> to vector<1x128xf32>
    %cst_65 = arith.constant dense<0.000000e+00> : vector<16xf32>
    %105 = vector.multi_reduction <add>, %100, %cst_65 [1] : vector<16x128xf32> to vector<16xf32>
    %106 = vector.shape_cast %105 : vector<16xf32> to vector<16x1xf32>
    %cst_66 = arith.constant 1.280000e+02 : f32
    %107 = vector.broadcast %cst_66 : f32 to vector<16x1xf32>
    %108 = arith.divf %106, %107 : vector<16x1xf32>
    %109 = vector.broadcast %108 : vector<16x1xf32> to vector<16x128xf32>
    %110 = arith.subf %100, %109 : vector<16x128xf32>
    %111 = arith.mulf %110, %110 : vector<16x128xf32>
    %cst_67 = arith.constant dense<0.000000e+00> : vector<16xf32>
    %112 = vector.multi_reduction <add>, %111, %cst_67 [1] : vector<16x128xf32> to vector<16xf32>
    %113 = vector.shape_cast %112 : vector<16xf32> to vector<16x1xf32>
    %cst_68 = arith.constant 1.280000e+02 : f32
    %114 = vector.broadcast %cst_68 : f32 to vector<16x1xf32>
    %115 = arith.divf %113, %114 : vector<16x1xf32>
    %cst_69 = arith.constant 9.99999996E-13 : f32
    %116 = vector.broadcast %cst_69 : f32 to vector<16x1xf32>
    %117 = arith.addf %115, %116 : vector<16x1xf32>
    %118 = math.rsqrt %117 : vector<16x1xf32>
    %119 = vector.broadcast %118 : vector<16x1xf32> to vector<16x128xf32>
    %120 = arith.mulf %110, %119 : vector<16x128xf32>
    %121 = vector.broadcast %102 : vector<1x128xf32> to vector<16x128xf32>
    %122 = arith.mulf %120, %121 : vector<16x128xf32>
    %123 = vector.broadcast %104 : vector<1x128xf32> to vector<16x128xf32>
    %124 = arith.addf %122, %123 : vector<16x128xf32>
    %125 = arith.truncf %124 : vector<16x128xf32> to vector<16x128xbf16>
    %c0_70 = arith.constant 0 : index
    %c0_71 = arith.constant 0 : index
    %c0_72 = arith.constant 0 : index
    %126 = vector.load %arg12[%c0_70, %c0_71, %c0_72] : memref<1x128x256xbf16, #tpu.memory_space<vmem>>, vector<1x128x256xbf16>
    %127 = vector.shape_cast %126 : vector<1x128x256xbf16> to vector<128x256xbf16>
    %cst_73 = arith.constant dense<0.000000e+00> : vector<16x256xf32>
    %128 = tpu.matmul %125, %127, %cst_73 {dimension_numbers = #tpu.dot_dimension_numbers<[1], [0], [0], [1], [0, 0, 1, 1], [], []>} : vector<16x128xbf16>, vector<128x256xbf16>, vector<16x256xf32> -> vector<16x256xf32>
    %c0_74 = arith.constant 0 : index
    %c0_75 = arith.constant 0 : index
    %c0_76 = arith.constant 0 : index
    %129 = vector.load %arg13[%c0_74, %c0_75, %c0_76] : memref<1x1x256xf32, #tpu.memory_space<vmem>>, vector<1x1x256xf32>
    %130 = vector.shape_cast %129 : vector<1x1x256xf32> to vector<1x256xf32>
    %131 = vector.broadcast %130 : vector<1x256xf32> to vector<16x256xf32>
    %132 = arith.addf %128, %131 : vector<16x256xf32>
    %cst_77 = arith.constant 5.000000e-01 : f32
    %133 = vector.broadcast %cst_77 : f32 to vector<16x256xf32>
    %134 = arith.mulf %133, %132 : vector<16x256xf32>
    %cst_78 = arith.constant 4.471500e-02 : f32
    %135 = vector.broadcast %cst_78 : f32 to vector<16x256xf32>
    %136 = arith.mulf %135, %132 : vector<16x256xf32>
    %137 = arith.mulf %136, %132 : vector<16x256xf32>
    %138 = arith.mulf %137, %132 : vector<16x256xf32>
    %139 = arith.addf %132, %138 : vector<16x256xf32>
    %cst_79 = arith.constant 0.797884583 : f32
    %140 = vector.broadcast %cst_79 : f32 to vector<16x256xf32>
    %141 = arith.mulf %140, %139 : vector<16x256xf32>
    %142 = math.tanh %141 : vector<16x256xf32>
    %cst_80 = arith.constant 1.000000e+00 : f32
    %143 = vector.broadcast %cst_80 : f32 to vector<16x256xf32>
    %144 = arith.addf %143, %142 : vector<16x256xf32>
    %145 = arith.mulf %134, %144 : vector<16x256xf32>
    %146 = arith.truncf %145 : vector<16x256xf32> to vector<16x256xbf16>
    %c0_81 = arith.constant 0 : index
    %c0_82 = arith.constant 0 : index
    %c0_83 = arith.constant 0 : index
    %147 = vector.load %arg14[%c0_81, %c0_82, %c0_83] : memref<1x256x128xbf16, #tpu.memory_space<vmem>>, vector<1x256x128xbf16>
    %148 = vector.shape_cast %147 : vector<1x256x128xbf16> to vector<256x128xbf16>
    %cst_84 = arith.constant dense<0.000000e+00> : vector<16x128xf32>
    %149 = tpu.matmul %146, %148, %cst_84 {dimension_numbers = #tpu.dot_dimension_numbers<[1], [0], [0], [1], [0, 0, 1, 1], [], []>} : vector<16x256xbf16>, vector<256x128xbf16>, vector<16x128xf32> -> vector<16x128xf32>
    %c0_85 = arith.constant 0 : index
    %c0_86 = arith.constant 0 : index
    %c0_87 = arith.constant 0 : index
    %150 = vector.load %arg15[%c0_85, %c0_86, %c0_87] : memref<1x1x128xf32, #tpu.memory_space<vmem>>, vector<1x1x128xf32>
    %151 = vector.shape_cast %150 : vector<1x1x128xf32> to vector<1x128xf32>
    %152 = vector.broadcast %151 : vector<1x128xf32> to vector<16x128xf32>
    %153 = arith.addf %149, %152 : vector<16x128xf32>
    %154 = arith.addf %153, %124 : vector<16x128xf32>
    %c0_88 = arith.constant 0 : index
    %c0_89 = arith.constant 0 : index
    %c0_90 = arith.constant 0 : index
    %155 = vector.load %arg16[%c0_88, %c0_89, %c0_90] : memref<1x1x128xf32, #tpu.memory_space<vmem>>, vector<1x1x128xf32>
    %156 = vector.shape_cast %155 : vector<1x1x128xf32> to vector<1x128xf32>
    %c0_91 = arith.constant 0 : index
    %c0_92 = arith.constant 0 : index
    %c0_93 = arith.constant 0 : index
    %157 = vector.load %arg17[%c0_91, %c0_92, %c0_93] : memref<1x1x128xf32, #tpu.memory_space<vmem>>, vector<1x1x128xf32>
    %158 = vector.shape_cast %157 : vector<1x1x128xf32> to vector<1x128xf32>
    %cst_94 = arith.constant dense<0.000000e+00> : vector<16xf32>
    %159 = vector.multi_reduction <add>, %154, %cst_94 [1] : vector<16x128xf32> to vector<16xf32>
    %160 = vector.shape_cast %159 : vector<16xf32> to vector<16x1xf32>
    %cst_95 = arith.constant 1.280000e+02 : f32
    %161 = vector.broadcast %cst_95 : f32 to vector<16x1xf32>
    %162 = arith.divf %160, %161 : vector<16x1xf32>
    %163 = vector.broadcast %162 : vector<16x1xf32> to vector<16x128xf32>
    %164 = arith.subf %154, %163 : vector<16x128xf32>
    %165 = arith.mulf %164, %164 : vector<16x128xf32>
    %cst_96 = arith.constant dense<0.000000e+00> : vector<16xf32>
    %166 = vector.multi_reduction <add>, %165, %cst_96 [1] : vector<16x128xf32> to vector<16xf32>
    %167 = vector.shape_cast %166 : vector<16xf32> to vector<16x1xf32>
    %cst_97 = arith.constant 1.280000e+02 : f32
    %168 = vector.broadcast %cst_97 : f32 to vector<16x1xf32>
    %169 = arith.divf %167, %168 : vector<16x1xf32>
    %cst_98 = arith.constant 9.99999996E-13 : f32
    %170 = vector.broadcast %cst_98 : f32 to vector<16x1xf32>
    %171 = arith.addf %169, %170 : vector<16x1xf32>
    %172 = math.rsqrt %171 : vector<16x1xf32>
    %173 = vector.broadcast %172 : vector<16x1xf32> to vector<16x128xf32>
    %174 = arith.mulf %164, %173 : vector<16x128xf32>
    %175 = vector.broadcast %156 : vector<1x128xf32> to vector<16x128xf32>
    %176 = arith.mulf %174, %175 : vector<16x128xf32>
    %177 = vector.broadcast %158 : vector<1x128xf32> to vector<16x128xf32>
    %178 = arith.addf %176, %177 : vector<16x128xf32>
    %179 = arith.truncf %178 : vector<16x128xf32> to vector<16x128xbf16>
    %c0_99 = arith.constant 0 : index
    %c0_100 = arith.constant 0 : index
    %180 = vector.load %arg21[%c0_99, %c0_100] : memref<16x128xbf16, #tpu.memory_space<vmem>>, vector<16x128xbf16>
    tpu.vector_store %arg21[%c0_99, %c0_100], %179 {strides = array<i32>} : memref<16x128xbf16, #tpu.memory_space<vmem>>, vector<16x128xbf16>,
    %c1_i32 = arith.constant 1 : i32
    %181 = arith.cmpi eq, %arg1, %c1_i32 : i32
    %182 = arith.extui %181 : i1 to i32
    %c0_i32_101 = arith.constant 0 : i32
    %183 = arith.cmpi ne, %182, %c0_i32_101 : i32
    scf.if %183 {
      %184 = arith.truncf %178 : vector<16x128xf32> to vector<16x128xbf16>
      %c0_102 = arith.constant 0 : index
      %c0_103 = arith.constant 0 : index
      %185 = vector.load %arg18[%c0_102, %c0_103] : memref<128x128xbf16, #tpu.memory_space<vmem>>, vector<128x128xbf16>
      %cst_104 = arith.constant dense<0.000000e+00> : vector<16x128xf32>
      %186 = tpu.matmul %184, %185, %cst_104 {dimension_numbers = #tpu.dot_dimension_numbers<[1], [0], [0], [1], [0, 0, 1, 1], [], []>} : vector<16x128xbf16>, vector<128x128xbf16>, vector<16x128xf32> -> vector<16x128xf32>
      %c0_105 = arith.constant 0 : index
      %c0_106 = arith.constant 0 : index
      %187 = vector.load %arg19[%c0_105, %c0_106] : memref<1x128xf32, #tpu.memory_space<vmem>>, vector<1x128xf32>
      %188 = vector.broadcast %187 : vector<1x128xf32> to vector<16x128xf32>
      %189 = arith.addf %186, %188 : vector<16x128xf32>
      %190 = vector.extract_strided_slice %189 {offsets = [0, 0], sizes = [1, 128], strides = [1, 1]} : vector<16x128xf32> to vector<1x128xf32>
      %c0_107 = arith.constant 0 : index
      %c0_108 = arith.constant 0 : index
      %c0_109 = arith.constant 0 : index
      %191 = vector.load %arg20[%c0_107, %c0_108, %c0_109] : memref<1x1x128xf32, #tpu.memory_space<vmem>>, vector<1x1x128xf32>
      %192 = vector.shape_cast %191 : vector<1x1x128xf32> to vector<1x128xf32>
      %193 = vector.shape_cast %190 : vector<1x128xf32> to vector<1x1x128xf32>
      tpu.vector_store %arg20[%c0_107, %c0_108, %c0_109], %193 {strides = array<i32>} : memref<1x1x128xf32, #tpu.memory_space<vmem>>, vector<1x1x128xf32>,
    } else {
    }
    return
  }
  func.func @transform_0(%arg0: i32, %arg1: i32) -> (i32, i32, i32) {
    %c0_i32 = arith.constant 0 : i32
    %c0_i32_0 = arith.constant 0 : i32
    %c0_i32_1 = arith.constant 0 : i32
    return %arg0, %c0_i32, %c0_i32_0 : i32, i32, i32
  }
  func.func @transform_1(%arg0: i32, %arg1: i32) -> (i32, i32, i32) {
    %c0_i32 = arith.constant 0 : i32
    %c0_i32_0 = arith.constant 0 : i32
    %c0_i32_1 = arith.constant 0 : i32
    return %arg0, %c0_i32, %c0_i32_0 : i32, i32, i32
  }
  func.func @transform_2(%arg0: i32, %arg1: i32) -> (i32, i32) {
    %c0_i32 = arith.constant 0 : i32
    %c0_i32_0 = arith.constant 0 : i32
    %c0_i32_1 = arith.constant 0 : i32
    return %c0_i32, %c0_i32_0 : i32, i32
  }
  func.func @transform_3(%arg0: i32, %arg1: i32) -> (i32, i32) {
    %c0_i32 = arith.constant 0 : i32
    %c0_i32_0 = arith.constant 0 : i32
    %c0_i32_1 = arith.constant 0 : i32
    return %c0_i32, %c0_i32_0 : i32, i32
  }
  func.func @transform_4(%arg0: i32, %arg1: i32) -> (i32, i32, i32) {
    %c0_i32 = arith.constant 0 : i32
    %c0_i32_0 = arith.constant 0 : i32
    %c0_i32_1 = arith.constant 0 : i32
    return %arg1, %c0_i32, %c0_i32_0 : i32, i32, i32
  }
  func.func @transform_5(%arg0: i32, %arg1: i32) -> (i32, i32, i32) {
    %c0_i32 = arith.constant 0 : i32
    %c0_i32_0 = arith.constant 0 : i32
    %c0_i32_1 = arith.constant 0 : i32
    return %arg1, %c0_i32, %c0_i32_0 : i32, i32, i32
  }
  func.func @transform_6(%arg0: i32, %arg1: i32) -> (i32, i32, i32) {
    %c0_i32 = arith.constant 0 : i32
    %c0_i32_0 = arith.constant 0 : i32
    %c0_i32_1 = arith.constant 0 : i32
    return %arg1, %c0_i32, %c0_i32_0 : i32, i32, i32
  }
  func.func @transform_7(%arg0: i32, %arg1: i32) -> (i32, i32, i32) {
    %c0_i32 = arith.constant 0 : i32
    %c0_i32_0 = arith.constant 0 : i32
    %c0_i32_1 = arith.constant 0 : i32
    return %arg1, %c0_i32, %c0_i32_0 : i32, i32, i32
  }
  func.func @transform_8(%arg0: i32, %arg1: i32) -> (i32, i32, i32) {
    %c0_i32 = arith.constant 0 : i32
    %c0_i32_0 = arith.constant 0 : i32
    %c0_i32_1 = arith.constant 0 : i32
    return %arg1, %c0_i32, %c0_i32_0 : i32, i32, i32
  }
  func.func @transform_9(%arg0: i32, %arg1: i32) -> (i32, i32, i32) {
    %c0_i32 = arith.constant 0 : i32
    %c0_i32_0 = arith.constant 0 : i32
    %c0_i32_1 = arith.constant 0 : i32
    return %arg1, %c0_i32, %c0_i32_0 : i32, i32, i32
  }
  func.func @transform_10(%arg0: i32, %arg1: i32) -> (i32, i32, i32) {
    %c0_i32 = arith.constant 0 : i32
    %c0_i32_0 = arith.constant 0 : i32
    %c0_i32_1 = arith.constant 0 : i32
    return %arg1, %c0_i32, %c0_i32_0 : i32, i32, i32
  }
  func.func @transform_11(%arg0: i32, %arg1: i32) -> (i32, i32, i32) {
    %c0_i32 = arith.constant 0 : i32
    %c0_i32_0 = arith.constant 0 : i32
    %c0_i32_1 = arith.constant 0 : i32
    return %arg1, %c0_i32, %c0_i32_0 : i32, i32, i32
  }
  func.func @transform_12(%arg0: i32, %arg1: i32) -> (i32, i32, i32) {
    %c0_i32 = arith.constant 0 : i32
    %c0_i32_0 = arith.constant 0 : i32
    %c0_i32_1 = arith.constant 0 : i32
    return %arg1, %c0_i32, %c0_i32_0 : i32, i32, i32
  }
  func.func @transform_13(%arg0: i32, %arg1: i32) -> (i32, i32, i32) {
    %c0_i32 = arith.constant 0 : i32
    %c0_i32_0 = arith.constant 0 : i32
    %c0_i32_1 = arith.constant 0 : i32
    return %arg1, %c0_i32, %c0_i32_0 : i32, i32, i32
  }
  func.func @transform_14(%arg0: i32, %arg1: i32) -> (i32, i32, i32) {
    %c0_i32 = arith.constant 0 : i32
    %c0_i32_0 = arith.constant 0 : i32
    %c0_i32_1 = arith.constant 0 : i32
    return %arg1, %c0_i32, %c0_i32_0 : i32, i32, i32
  }
  func.func @transform_15(%arg0: i32, %arg1: i32) -> (i32, i32, i32) {
    %c0_i32 = arith.constant 0 : i32
    %c0_i32_0 = arith.constant 0 : i32
    %c0_i32_1 = arith.constant 0 : i32
    return %arg1, %c0_i32, %c0_i32_0 : i32, i32, i32
  }
  func.func @transform_16(%arg0: i32, %arg1: i32) -> (i32, i32) {
    %c0_i32 = arith.constant 0 : i32
    %c0_i32_0 = arith.constant 0 : i32
    %c0_i32_1 = arith.constant 0 : i32
    return %c0_i32, %c0_i32_0 : i32, i32
  }
  func.func @transform_17(%arg0: i32, %arg1: i32) -> (i32, i32) {
    %c0_i32 = arith.constant 0 : i32
    %c0_i32_0 = arith.constant 0 : i32
    %c0_i32_1 = arith.constant 0 : i32
    return %c0_i32, %c0_i32_0 : i32, i32
  }
  func.func @transform_18(%arg0: i32, %arg1: i32) -> (i32, i32, i32) {
    %c0_i32 = arith.constant 0 : i32
    %c0_i32_0 = arith.constant 0 : i32
    %c0_i32_1 = arith.constant 0 : i32
    return %arg0, %c0_i32, %c0_i32_0 : i32, i32, i32
  }
}

</mosaic_0001>

<bundles_post_ra>
// kernel: bert_for_classification.1
= control target key start
LH: loop header
LB: loop body
LE: loop exit
PB: predicated region body
PF: predicated region fallthrough
CT: control target
= control target key end

     0   :  { %s3869_s0 = inlined_call_operand.vmem [shape: bf16[2,16,128], index: 0, kind: input, shape index: {}]   ;;  %s3870_s1 = inlined_call_operand.vmem [shape: f32[2,1,16], index: 1, kind: input, shape index: {}]   ;;  %s3871_s2 = inlined_call_operand.vmem [shape: f32[1,128], index: 2, kind: input, shape index: {}]   ;;  %s3872_s3 = inlined_call_operand.vmem [shape: f32[1,128], index: 3, kind: input, shape index: {}]   ;;  %s3873_s4 = inlined_call_operand.vmem [shape: bf16[2,128,384], index: 4, kind: input, shape index: {}]   ;;  %s3874_s5 = inlined_call_operand.vmem [shape: f32[2,1,384], index: 5, kind: input, shape index: {}]   ;;  %s3875_s6 = inlined_call_operand.vmem [shape: bf16[2,128,128], index: 6, kind: input, shape index: {}]   ;;  %s3876_s7 = inlined_call_operand.vmem [shape: f32[2,1,128], index: 7, kind: input, shape index: {}]   ;;  %s3877_s8 = inlined_call_operand.vmem [shape: f32[2,1,128], index: 8, kind: input, shape index: {}]   ;;  %s3878_s9 = inlined_call_operand.vmem [shape: f32[2,1,128], index: 9, kind: input, shape index: {}]   ;;  %s3879_s10 = inlined_call_operand.vmem [shape: bf16[2,128,256], index: 10, kind: input, shape index: {}]   ;;  %s3880_s11 = inlined_call_operand.vmem [shape: f32[2,1,256], index: 11, kind: input, shape index: {}]   ;;  %s3881_s12 = inlined_call_operand.hbm [shape: bf16[2,256,128], index: 12, kind: input, shape index: {}]   ;;  %s3882_s13 = inlined_call_operand.vmem [shape: f32[2,1,128], index: 13, kind: input, shape index: {}]   ;;  %s3883_s14 = inlined_call_operand.vmem [shape: f32[2,1,128], index: 14, kind: input, shape index: {}]   ;;  %s3884_s15 = inlined_call_operand.vmem [shape: f32[2,1,128], index: 15, kind: input, shape index: {}]   ;;  %s3885_s16 = inlined_call_operand.hbm [shape: bf16[128,128], index: 16, kind: input, shape index: {}]   ;;  %s3886_s17 = inlined_call_operand.vmem [shape: f32[1,128], index: 17, kind: input, shape index: {}]   ;;  %s3887_s18 = inlined_call_operand.vmem [shape: f32[2,1,128], index: 18, kind: output, shape index: {}]  }
   0x1   :  { %3896 = sst [smem:[#allocation19_spill]] %s3869_s0 }
   0x2   :  { %3897 = sst [smem:[#allocation20_spill]] %s3870_s1 }
   0x3   :  { %3898 = sst [smem:[#allocation21_spill]] %s3871_s2 }
   0x4   :  { %3899 = sst [smem:[#allocation22_spill]] %s3872_s3 }
   0x5   :  { %3900 = sst [smem:[#allocation23_spill]] %s3873_s4 }
   0x6   :  { %3901 = sst [smem:[#allocation24_spill]] %s3874_s5 }
   0x7   :  { %3902 = sst [smem:[#allocation25_spill]] %s3875_s6 }
   0x8   :  { %3903 = sst [smem:[#allocation26_spill]] %s3877_s8 }
   0x9   :  { %3904 = sst [smem:[#allocation27_spill]] %s3878_s9 }
   0xa   :  { %3905 = sst [smem:[#allocation28_spill]] %s3879_s10 }
   0xb   :  { %3906 = sst [smem:[#allocation29_spill]] %s3880_s11 }
   0xc   :  { %3907 = sst [smem:[#allocation30_spill]] %s3881_s12 }
   0xd   :  { %3908 = sst [smem:[#allocation31_spill]] %s3882_s13 }
   0xe   :  { %3909 = sst [smem:[#allocation32_spill]] %s3883_s14 }
   0xf   :  { %3910 = sst [smem:[#allocation33_spill]] %s3884_s15 }
  0x10   :  { %3911 = sst [smem:[#allocation34_spill]] %s3885_s16 }
  0x11   :  { %3912 = sst [smem:[#allocation35_spill]] %s3886_s17 }
  0x12   :  { %3913 = sst [smem:[#allocation36_spill]] %s3887_s18 }
  0x13   :  { %23 = vsyncpa [#allocation6], 0 }
  0x14   :  { %25 = vsyncpa [#allocation6 + $0x1], 0 }
  0x15   :  { %26 = vsyncpa [#allocation8], 0  ;;  %s3351_s27 = smov 0   ;;  %s3353_s28 = smov 0  }
  0x16   :  { %s3355_s29 = smov 0   ;;  %s3357_s30 = smov 0  }
  0x17   :  { %s3359_s0 = smov 0   ;;  %s3361_s19 = smov 0  }
  0x18   :  { %s3363_s1 = smov 0   ;;  %s3365_s20 = smov 0  }
  0x19 LB: > { %3914 = sst [smem:[#allocation11_spill]] %s3222_s28  ;;  %s2480_s21 = sadd.s32 4294967295, %s3246_s20   ;;  %s3246_s20 = sphi %s3365_s20, %s32_s20   ;;  %s3242_s1 = sphi %s3363_s1, %s3970_s1   ;;  %s3238_s19 = sphi %s3361_s19, %s3969_s19   ;;  %s3234_s0 = sphi %s3359_s0, %s3968_s0   ;;  %s3230_s30 = sphi %s3357_s30, %s3967_s30   ;;  %s3226_s29 = sphi %s3355_s29, %s3966_s29   ;;  %s3222_s28 = sphi %s3353_s28, %s3965_s28   ;;  %s3218_s27 = sphi %s3351_s27, %s3964_s27  }
  0x1a   : > { %3915 = sst [smem:[#allocation12_spill]] %s3226_s29  ;;  %p366_p0 = scmp.ne.s32.totalorder %s3222_s28, %s3218_s27 }
  0x1b   : > { %3916 = sst [smem:[#allocation13_spill]] %s3238_s19  ;;  %p3391_p1 = scmp.eq.s32.totalorder %s2480_s21, 0 }
  0x1c   : > { %3917 = sst [smem:[#allocation14_spill]] %s3242_s1  ;;  %p2482_p2 = scmp.ge.s32.totalorder %s3246_s20, 1 }
  0x1d   : > { %3918 = sst [smem:[#allocation15_spill]] %s3246_s20  ;;  %p523_p3 = scmp.lt.s32.totalorder %s3246_s20, 5 }
  0x1e   : > { %p3399_p4 = por %p3391_p1, %p366_p0  ;;  %s3921_s16 = sld [smem:[#allocation34_spill]] }
  0x1f   : > { %p3406_p5 = pnand %p2482_p2, %p523_p3  ;;  %s3248_s27 = smov [#allocation7]  }
  0x20   : > { %s542_s21 = sshll.u32 %s3248_s27, 4  ;;  %s3888_s23 = smov 64   ;;  %s543_s21 = int_to_ptr.vmem [resolvable:$true] %s542_s21 }
  0x21   : > { %p2967_p6 = pneg %p3406_p5  ;;  %s3889_s24 = smov 4  }
  0x22   : > { %s44_s17 = sadd.s32 1, %s3242_s1  ;;  %s353_s3 = sadd.s32 1, %s3226_s29 }
  0x23   : > { %p2968_p7 = pnand %p2967_p6, %p3391_p1  ;;  %p360_p9 = scmp.ne.s32.totalorder %s3226_s29, %s3222_s28 }
  0x24   : > { %s540_s25 = sshll.u32 %s3921_s16, 4  ;;  %s41_s16 = sadd.s32 1, %s3238_s19  ;;  %s541_s25 = int_to_ptr.hbm [resolvable:$true] %s540_s25 }
  0x25   : > { %2970 = dma.hbm_to_vmem [thread:$0]  (!%p2968_p7), %s541_s25, 1024, %s543_s21, [#allocation8], %s3888_s23, %s3888_s23, %s3889_s24  }
  0x26   : > { %p42_p8 = scmp.ge.s32.totalorder %s41_s16, 2  ;;  %p361_p10 = scmp.eq.s32.totalorder %s3246_s20, 0 }
  0x27   : > { %s629_s21 = sand.u32 1, %s3226_s29   ;;  %s2855_s23 = sshll.u32 %s3238_s19, 7 }
  0x28   : > { %s3972_s16 = smov (%p42_p8, %s41_s16), 0  ;;  %s3974_s17 = smov (!%p42_p8, %s44_s17), %s3242_s1 }
  0x29   : > { %3923 = sst [smem:[#allocation16_spill]] %s3972_s16  ;;  %s350_s27 = ssub.s32 %s3238_s19, %s3972_s16 }
  0x2a   : > { %p46_p11 = scmp.ge.s32.totalorder %s3974_s17, 2  ;;  %p351_p12 = scmp.eq.s32.totalorder %s350_s27, 0 }
  0x2b   : > { %p3428_p13 = por %p361_p10, %p360_p9  ;;  %p2976_p0 = scmp.lt.s32.totalorder %s3246_s20, 4 }
  0x2c   : > { %s3976_s17 = smov (%p46_p11, %s3974_s17), 0  ;;  %s2485_s24 = sshll.u32 %s629_s21, 7 }
  0x2d   : > { %3925 = sst [smem:[#allocation17_spill]] %s3976_s17  ;;  %s633_s13 = scalar_lea.vmem [#allocation5], %s2485_s24 }
  0x2e   : > { %s3435_s25 = scalar_select %p351_p12, %s3226_s29, %s353_s3  }
  0x2f   : > { %s3927_s12 = sld [smem:[#allocation30_spill]]  ;;  %s641_s27 = sshll.u32 %s633_s13, 4  ;;  %s642_s27 = int_to_ptr.vmem [resolvable:$true] %s641_s27 }
  0x30   : > { %3926 = sst [smem:[#allocation18_spill]] %s3435_s25  ;;  %p2972_p2 = pnand %p2976_p0, %p3428_p13 }
  0x31   : > { %s630_s11 = scalar_lea.sflag [#allocation6], %s629_s21  ;;  %s3928_s10 = smov 4  }
  0x32   : > { %s3929_s17 = smov 64   ;;  %s673_s3 = sand.u32 (!%p3406_p5), 1, %s3222_s28  }
  0x33   : > { %671 = sbr.rel (%p3406_p5) target bundleno = 2812 (0xafc), region = 92  ;;  %s2489_s14 = sshll.u32 (!%p3406_p5), %s673_s3, 7 }
  0x34   : > { %s674_s15 = scalar_lea.sflag (!%p3406_p5), [#allocation6], %s673_s3 }
  0x35   : > { %s638_s16 = scalar_lea.hbm %s3927_s12, %s2855_s23 }
  0x36   : > { %s639_s1 = sshll.u32 %s638_s16, 4  ;;  %s3451_s16 = scalar_lea.vmem (!%p3406_p5), [#allocation5], %s2489_s14  ;;  %s640_s1 = int_to_ptr.hbm [resolvable:$true] %s639_s1 }
  0x37   : > { %2974 = dma.hbm_to_vmem [thread:$0]  (!%p2972_p2), %s640_s1, 2048, %s642_s27, %s630_s11, %s3929_s17, %s3929_s17, %s3928_s10  }
  0x38   : > { %3209 = dma.done.wait (%p3399_p4), %s674_s15, 2048  }
  0x39   : > { %3211 = vsyncadd (%p3399_p4), %s674_s15, 4294965248 }
  0x3a   : > { %3213 = dma.done.wait (%p3391_p1), [#allocation8], 1024  }
  0x3b   : > { %3215 = vsyncadd (%p3391_p1), [#allocation8], 4294966272  ;;  %p783_p3 = scmp.lt.s32.totalorder %s3234_s0, 1  ;;  %p791_p5 = scmp.lt.s32.totalorder %s3230_s30, 1 }
  0x3c   : > { %s3931_s26 = sld [smem:[#allocation19_spill]]  ;;  %p2499_p1 = scmp.ne.s32.totalorder %s3230_s30, 0 }
  0x3d   : > { %s3978_s0 = smov (!%p783_p3, %s3234_s0), 1  ;;  %s3932_s4 = sld [smem:[#allocation23_spill]] }
  0x3e   : > { %s3467_s10 = scalar_select %p791_p5, %s3230_s30, 1 }
  0x3f   : > { %s2856_s11 = sshll.u32 %s3978_s0, 3  ;;  %s3933_s6 = sld [smem:[#allocation25_spill]] }
  0x40   : > { %s2959_s24 = smul.u32 192, %s3467_s10  ;;  %s2857_s27 = sshll.u32 %s3467_s10, 6 }
  0x41   : > { %s2960_s21 = smul.u32 3, %s3467_s10  ;;  %s3934_s5 = sld [smem:[#allocation24_spill]] }
  0x42   : > { %s787_s23 = scalar_lea.vmem %s3931_s26, %s2856_s11  ;;  %s2858_s12 = sshll.u32 %s3467_s10, 7 }
  0x43   : > { %s3483_s15 = scalar_lea.vmem %s3932_s4, %s2959_s24  ;;  %s2498_s19 = sshll.u32 %s3467_s10, 1 }
  0x44   : > { %s3937_s29 = sld [smem:[#allocation28_spill]] }
  0x45   : > { %s3488_s13 = scalar_lea.vmem %s3933_s6, %s2857_s27  ;;  %s3939_s25 = sld [smem:[#allocation31_spill]] }
  0x46   : > { %s3940_s24 = sld [smem:[#allocation32_spill]] }
  0x47   : > { %s3493_s22 = scalar_lea.vmem %s3934_s5, %s2960_s21  ;;  %s3938_s5 = sld [smem:[#allocation29_spill]] }
  0x48   : > { %s3941_s9 = sld [smem:[#allocation33_spill]] }
  0x4a   : > { %s3512_s17 = scalar_lea.vmem %s3937_s29, %s2858_s12  ;;  %s3942_s12 = sld [smem:[#allocation36_spill]] }
  0x4b   : > { %s825_s1 = scalar_lea.vmem %s3939_s25, %s3467_s10 }
  0x4c   : > { %s828_s14 = scalar_lea.vmem %s3940_s24, %s3467_s10  ;;  %839 = sbr.rel (%p2499_p1) target bundleno = 361 (0x169), region = 104 }
  0x4d   : > { %s3517_s11 = scalar_lea.vmem %s3938_s5, %s2498_s19 }
  0x4e   : > { %s831_s8 = scalar_lea.vmem %s3941_s9, %s3467_s10  ;;  %s3943_s9 = sld [smem:[#allocation21_spill]] (!%p2499_p1) }
  0x50   : > { %s834_s27 = scalar_lea.vmem %s3942_s12, %s3978_s0 }
  0x51   : > { %v2946_v0 = vld [vmem:[%s787_s23] sm:$0xff]   ;;  %v3251_v3 = vmov 128.0   ;;  %s3944_s23 = sld [smem:[#allocation22_spill]] }
  0x52   : > { %v2947_v1 = vunpack.c.l.bf16 %v2946_v0  ;;  %v2948_v2 = vunpack.c.h.bf16 %v2946_v0  ;;  %3052 = vrcp.f32 %v3251_v3 }
  0x54   : > { %846 = vadd.xlane.f32.xlu0 %v2947_v1  ;;  %v3050_v36 = vld [vmem:[%s3943_s9] ss:$0 sm:$0xff] }
  0x57   : > { %v3051_v40 = vld [vmem:[%s3944_s23] ss:$0 sm:$0xff] }
  0x58   : > { %v3053_v4 = vpop.eup %3052 }
  0x59   : > { %v851_v5 = vmul.f32 128.0, %v3053_v4  ;;  %vm855_vm0 = vweird.f32 %v3053_v4 }
  0x5b   : > { %v852_v6 = vsub.f32 1.0, %v851_v5 }
  0x5c   : > { %848 = vadd.xlane.f32.xlu0 %v2948_v2 }
  0x5d   : > { %v853_v7 = vmul.f32 %v3053_v4, %v852_v6 }
  0x5f   : > { %v854_v8 = vadd.f32 %v3053_v4, %v853_v7 }
  0x61   : > { %v856_v9 = vsel %vm855_vm0, %v3053_v4, %v854_v8 }
  0xc7   : > { %v847_v10 = vpop.xlane.xlu0 %846 }
  0xc8   : > { %v857_v11 = vmul.f32 %v856_v9, %v847_v10 }
  0xca   : > { %v859_v12 = vsub.f32 %v2947_v1, %v857_v11 }
  0xcc   : > { %v861_v13 = vmul.f32 %v859_v12, %v859_v12 }
  0xce   : > { %863 = vadd.xlane.f32.xlu1 %v861_v13 }
  0xcf   : > { %v849_v14 = vpop.xlane.xlu0 %848 }
  0xd0   : > { %v858_v15 = vmul.f32 %v856_v9, %v849_v14 }
  0xd2   : > { %v860_v16 = vsub.f32 %v2948_v2, %v858_v15 }
  0xd4   : > { %v862_v17 = vmul.f32 %v860_v16, %v860_v16 }
  0xd6   : > { %865 = vadd.xlane.f32.xlu1 %v862_v17 }
 0x141   : > { %v864_v18 = vpop.xlane.xlu1 %863 }
 0x142   : > { %v867_v19 = vmul.f32 %v864_v18, %v856_v9 }
 0x144   : > { %v869_v20 = vadd.f32 1e-12, %v867_v19 }
 0x146   : > { %3054 = vrsqrt.f32 %v869_v20  ;;  %vm877_vm2 = vweird.f32 %v869_v20 }
 0x149   : > { %v866_v21 = vpop.xlane.xlu1 %865 }
 0x14a   : > { %v868_v22 = vmul.f32 %v866_v21, %v856_v9 }
 0x14c   : > { %v3055_v23 = vpop.eup %3054  ;;  %v870_v24 = vadd.f32 1e-12, %v868_v22 }
 0x14d   : > { %v872_v25 = vmul.f32 %v3055_v23, %v869_v20  ;;  %vm878_vm1 = vweird.f32 %v3055_v23 }
 0x14e   : > { %3056 = vrsqrt.f32 %v870_v24  ;;  %vm879_vm3 = vmor %vm877_vm2, %vm878_vm1  ;;  %vm887_vm5 = vweird.f32 %v870_v24 }
 0x14f   : > { %v873_v26 = vmul.f32 %v3055_v23, %v872_v25 }
 0x151   : > { %v874_v27 = vmul.f32 0.5, %v873_v26 }
 0x153   : > { %v875_v28 = vsub.f32 1.5, %v874_v27 }
 0x154   : > { %v3057_v29 = vpop.eup %3056 }
 0x155   : > { %v876_v30 = vmul.f32 %v3055_v23, %v875_v28  ;;  %v882_v31 = vmul.f32 %v3057_v29, %v870_v24  ;;  %vm888_vm4 = vweird.f32 %v3057_v29 }
 0x156   : > { %vm889_vm6 = vmor %vm887_vm5, %vm888_vm4 }
 0x157   : > { %v883_v32 = vmul.f32 %v3057_v29, %v882_v31  ;;  %v880_v33 = vsel %vm879_vm3, %v3055_v23, %v876_v30 }
 0x158   : > { %v891_v37 = vmul.f32 %v880_v33, %v859_v12 }
 0x159   : > { %v884_v34 = vmul.f32 0.5, %v883_v32 }
 0x15a   : > { %v896_v41 = vmul.f32 %v3050_v36, %v891_v37 }
 0x15b   : > { %v885_v35 = vsub.f32 1.5, %v884_v34 }
 0x15c   : > { %v901_v44 = vadd.f32 %v3051_v40, %v896_v41 }
 0x15d   : > { %v886_v38 = vmul.f32 %v3057_v29, %v885_v35 }
 0x15f   : > { %v890_v39 = vsel %vm889_vm6, %v3057_v29, %v886_v38 }
 0x160   : > { %v892_v42 = vmul.f32 %v890_v39, %v860_v16 }
 0x162   : > { %v897_v43 = vmul.f32 %v3050_v36, %v892_v42 }
 0x164   : > { %v902_v45 = vadd.f32 %v3051_v40, %v897_v43 }
 0x166   : > { %v2952_v46 = vpack.c.bf16 %v902_v45, %v901_v44 }
 0x168   : > { %2953 = vst [vmem:[#allocation2] sm:$0xff] %v2952_v46  }
 0x169 PF: > { %v2590_v47 = vld [vmem:[%s3483_s15 + $0xa8] sm:$0xf]  ;;  %v2882_v48 = vld [vmem:[%s3483_s15 + $0xb0] sm:$0xf0]  ;;  %v2881_v49 = vld [vmem:[%s3483_s15 + $0xac] sm:$0xf]  ;;  %s3953_s25 = scalar_lea.vmem %s3876_s7, %s3467_s10 }
 0x16a   : > { %v2591_v50 = vor.u32 %v2882_v48, %v2590_v47  ;;  %v2592_v51 = vld [vmem:[%s3483_s15 + $0xb4] sm:$0xf0]  ;;  %v2578_v52 = vld [vmem:[%s3483_s15 + $0x90] sm:$0xf]  ;;  %v2879_v53 = vld [vmem:[%s3483_s15 + $0x98] sm:$0xf0] }
 0x16b   : > { %v2595_v54 = vor.u32 %v2881_v49, %v2592_v51  ;;  %v2878_v55 = vld [vmem:[%s3483_s15 + $0x94] sm:$0xf]  ;;  %v2580_v56 = vld [vmem:[%s3483_s15 + $0x9c] sm:$0xf0]  ;;  %v2579_v57 = vor.u32 %v2879_v53, %v2578_v52  ;;  %v2566_v59 = vld [vmem:[%s3483_s15 + $0x78] sm:$0xf] }
 0x16c   : > { %1083 = vmatpush.bf16.msra.mxu0 %v2591_v50  ;;  %v2583_v58 = vor.u32 %v2878_v55, %v2580_v56  ;;  %v2876_v60 = vld [vmem:[%s3483_s15 + $0x80] sm:$0xf0]  ;;  %v2875_v61 = vld [vmem:[%s3483_s15 + $0x7c] sm:$0xf]  ;;  %v2568_v62 = vld [vmem:[%s3483_s15 + $0x84] sm:$0xf0] }
 0x16d   : > { %1097 = vmatpush.bf16.msra.mxu1 %v2595_v54  ;;  %v2567_v63 = vor.u32 %v2876_v60, %v2566_v59  ;;  %v2571_v0 = vor.u32 %v2875_v61, %v2568_v62  ;;  %v2554_v1 = vld [vmem:[%s3483_s15 + $0x60] sm:$0xf]  ;;  %v2873_v2 = vld [vmem:[%s3483_s15 + $0x68] sm:$0xf0]  ;;  %v2872_v3 = vld [vmem:[%s3483_s15 + $0x64] sm:$0xf] }
 0x16e   : > { %v2556_v4 = vld [vmem:[%s3483_s15 + $0x6c] sm:$0xf0]  ;;  %v2555_v5 = vor.u32 %v2873_v2, %v2554_v1  ;;  %v2883_v7 = vld [vmem:[%s3483_s15 + $0xb8] sm:$0xf0]  ;;  %v2586_v8 = vld [vmem:[%s3483_s15 + $0x98] sm:$0xf] }
 0x16f   : > { %v2598_v6 = vld [vmem:[%s3483_s15 + $0xb0] sm:$0xf]  ;;  %v2559_v9 = vor.u32 %v2872_v3, %v2556_v4  ;;  %v2542_v10 = vld [vmem:[%s3483_s15 + $0x48] sm:$0xf]  ;;  %v2870_v11 = vld [vmem:[%s3483_s15 + $0x50] sm:$0xf0] }
 0x170   : > { %1084 = vmatpush.bf16.msra.mxu0 %v2579_v57  ;;  %v2599_v12 = vor.u32 %v2883_v7, %v2598_v6  ;;  %v2880_v13 = vld [vmem:[%s3483_s15 + $0xa0] sm:$0xf0]  ;;  %v2869_v14 = vld [vmem:[%s3483_s15 + $0x4c] sm:$0xf]  ;;  %v2544_v15 = vld [vmem:[%s3483_s15 + $0x54] sm:$0xf0]  ;;  %v2543_v17 = vor.u32 %v2870_v11, %v2542_v10 }
 0x171   : > { %1098 = vmatpush.bf16.msra.mxu1 %v2583_v58  ;;  %v2587_v16 = vor.u32 %v2880_v13, %v2586_v8  ;;  %v2530_v18 = vld [vmem:[%s3483_s15 + $0x30] sm:$0xf]  ;;  %v2574_v19 = vld [vmem:[%s3483_s15 + $0x80] sm:$0xf]  ;;  %v2877_v20 = vld [vmem:[%s3483_s15 + $0x88] sm:$0xf0]  ;;  %v2547_v21 = vor.u32 %v2869_v14, %v2544_v15 }
 0x172   : > { %1111 = vmatpush.bf16.msra.mxu2 %v2599_v12  ;;  %v2867_v22 = vld [vmem:[%s3483_s15 + $0x38] sm:$0xf0]  ;;  %v2866_v23 = vld [vmem:[%s3483_s15 + $0x34] sm:$0xf]  ;;  %v2532_v24 = vld [vmem:[%s3483_s15 + $0x3c] sm:$0xf0]  ;;  %v2575_v25 = vor.u32 %v2877_v20, %v2574_v19 }
 0x173   : > { %v2531_v26 = vor.u32 %v2867_v22, %v2530_v18  ;;  %v2562_v27 = vld [vmem:[%s3483_s15 + $0x68] sm:$0xf]  ;;  %v2874_v28 = vld [vmem:[%s3483_s15 + $0x70] sm:$0xf0]  ;;  %v2535_v29 = vor.u32 %v2866_v23, %v2532_v24  ;;  %v2518_v30 = vld [vmem:[%s3483_s15 + $0x18] sm:$0xf] }
 0x174   : > { %1085 = vmatpush.bf16.msra.mxu0 %v2567_v63  ;;  %v2864_v31 = vld [vmem:[%s3483_s15 + $0x20] sm:$0xf0]  ;;  %v2863_v32 = vld [vmem:[%s3483_s15 + $0x1c] sm:$0xf]  ;;  %v2520_v33 = vld [vmem:[%s3483_s15 + $0x24] sm:$0xf0]  ;;  %v2563_v34 = vor.u32 %v2874_v28, %v2562_v27 }
 0x175   : > { %1099 = vmatpush.bf16.msra.mxu1 %v2571_v0  ;;  %v2519_v35 = vor.u32 %v2864_v31, %v2518_v30  ;;  %v2550_v36 = vld [vmem:[%s3483_s15 + $0x50] sm:$0xf]  ;;  %v2871_v37 = vld [vmem:[%s3483_s15 + $0x58] sm:$0xf0]  ;;  %v2523_v38 = vor.u32 %v2863_v32, %v2520_v33  ;;  %v2506_v39 = vld [vmem:[%s3483_s15] sm:$0xf] }
 0x176   : > { %1112 = vmatpush.bf16.msra.mxu2 %v2587_v16  ;;  %v2861_v40 = vld [vmem:[%s3483_s15 + $0x8] sm:$0xf0]  ;;  %v2860_v41 = vld [vmem:[%s3483_s15 + $0x4] sm:$0xf]  ;;  %v2508_v42 = vld [vmem:[%s3483_s15 + $0xc] sm:$0xf0]  ;;  %v2551_v43 = vor.u32 %v2871_v37, %v2550_v36 }
 0x177   : > { %v2507_v44 = vor.u32 %v2861_v40, %v2506_v39  ;;  %v2538_v45 = vld [vmem:[%s3483_s15 + $0x38] sm:$0xf]  ;;  %v2868_v46 = vld [vmem:[%s3483_s15 + $0x40] sm:$0xf0]  ;;  %v2511_v47 = vor.u32 %v2860_v41, %v2508_v42  ;;  %v2526_v50 = vld [vmem:[%s3483_s15 + $0x20] sm:$0xf] }
 0x178   : > { %1086 = vmatpush.bf16.msra.mxu0 %v2555_v5  ;;  %v2859_v48 = vld [vmem:[#allocation2] sm:$0xff]  ;;  %v2539_v49 = vor.u32 %v2868_v46, %v2538_v45  ;;  %v2865_v51 = vld [vmem:[%s3483_s15 + $0x28] sm:$0xf0]  ;;  %v2514_v53 = vld [vmem:[%s3483_s15 + $0x8] sm:$0xf]  ;;  %vm1153_vm7 = vcmask 261120  }
 0x179   : > { %1100 = vmatpush.bf16.msra.mxu1 %v2559_v9  ;;  %v2527_v52 = vor.u32 %v2865_v51, %v2526_v50  ;;  %v2862_v54 = vld [vmem:[%s3483_s15 + $0x10] sm:$0xf0]  ;;  %v941_v56 = vld [vmem:[%s3493_s22] sm:$0x7]  ;;  %s3252_s15 = smov 96   ;;  %s3253_s22 = smov 64  }
 0x17a   : > { %1113 = vmatpush.bf16.msra.mxu2 %v2575_v25  ;;  %v2515_v55 = vor.u32 %v2862_v54, %v2514_v53  ;;  %v943_v57 = vperm.slane %v941_v56, 0  ;;  %v944_v58 = vperm.slane %v941_v56, 1  ;;  %v945_v5 = vperm.slane %v941_v56, 2  ;;  %s3254_s26 = smov 32   ;;  %s3945_s21 = sld [smem:[#allocation20_spill]] }
 0x17b   : > { %vm1174_vm8 = vcmask 130048   ;;  %vm1249_vm1 = vcmask 257024   ;;  %s3954_s6 = sld [smem:[#allocation26_spill]]  ;;  %p2820_p4 = scmp.ne.s32.totalorder %s3230_s30, 1 }
 0x17c   : > { %1087 = vmatpush.bf16.msra.mxu0 %v2543_v17  ;;  %s3956_s5 = sld [smem:[#allocation27_spill]] }
 0x17d   : > { %1101 = vmatpush.bf16.msra.mxu1 %v2547_v21 }
 0x17e   : > { %1114 = vmatpush.bf16.msra.mxu2 %v2563_v34 }
 0x180   : > { %1088 = vmatpush.bf16.msra.mxu0 %v2531_v26  ;;  %s3946_s18 = scalar_lea.vmem %s3945_s21, %s3978_s0 }
 0x181   : > { %1102 = vmatpush.bf16.msra.mxu1 %v2535_v29  ;;  %v3603_v36 = vld [vmem:[%s3946_s18] ss:$0 sm:$0xff]  ;;  %s3955_s29 = scalar_lea.vmem %s3954_s6, %s3467_s10 }
 0x182   : > { %1115 = vmatpush.bf16.msra.mxu2 %v2551_v43  ;;  %s3957_s9 = scalar_lea.vmem %s3956_s5, %s3467_s10  ;;  %s3961_s10 = sld [smem:[#allocation35_spill]] (!%p2820_p4) }
 0x184   : > { %1089 = vmatpush.bf16.msra.mxu0 %v2519_v35 }
 0x185   : > { %1103 = vmatpush.bf16.msra.mxu1 %v2523_v38 }
 0x186   : > { %1116 = vmatpush.bf16.msra.mxu2 %v2539_v49 }
 0x188   : > { %1090 = vmatpush.bf16.msra.mxu0 %v2507_v44 }
 0x189   : > { %1104 = vmatpush.bf16.msra.mxu1 %v2511_v47 }
 0x18a   : > { %1117 = vmatpush.bf16.msra.mxu2 %v2527_v52 }
 0x18b   : > { %1091 = vmatmul.bf16.vlgmr.msra.gmra.mxu0 %v2859_v48 }
 0x18c   : > { %1105 = vmatmul.bf16.vlgmr.msra.gmra.mxu1 %v2859_v48 }
 0x18e   : > { %1118 = vmatpush.bf16.msra.mxu2 %v2515_v55 }
 0x191   : > { %1119 = vmatmul.bf16.vlgmr.msra.gmra.mxu2 %v2859_v48 }
 0x208   : > { %v1092_v59 = vpop.f32.mrf.mxu0 }
 0x209   : > { %v1093_v60 = vadd.f32 %v1092_v59, %v943_v57  ;;  %v1106_v61 = vpop.f32.mrf.mxu1 }
 0x20a   : > { %v1107_v62 = vadd.f32 %v1106_v61, %v944_v58 }
 0x20c   : > { %v1125_v63 = vpack.c.bf16 %v1107_v62, %v1093_v60 }
 0x20e   : > { %1129 = vst [vmem:[#allocation3] sm:$0xff] %v1125_v63 }
 0x210   : > { %v1094_v0 = vpop.f32.mrf.mxu0 }
 0x211   : > { %v1095_v1 = vadd.f32 %v1094_v0, %v943_v57  ;;  %v1108_v2 = vpop.f32.mrf.mxu1 }
 0x212   : > { %v1109_v3 = vadd.f32 %v1108_v2, %v944_v58 }
 0x214   : > { %v1127_v4 = vpack.c.bf16 %v1109_v3, %v1095_v1  ;;  %v1120_v6 = vpop.f32.mrf.mxu2 }
 0x215   : > { %v1121_v7 = vadd.f32 %v1120_v6, %v945_v5  ;;  %v2620_v8 = vld [vmem:[#allocation3 + $0x4] sm:$0xf]  ;;  %v2616_v21 = vld [vmem:[#allocation3] sm:$0xf] }
 0x216   : > { %1131 = vst [vmem:[#allocation3 + $0xc] sm:$0xff] %v1127_v4  ;;  %v2606_v11 = vld [vmem:[#allocation3 + $0x4] sm:$0xf]  ;;  %v2602_v22 = vld [vmem:[#allocation3] sm:$0xf] }
 0x217   : > { %v1126_v9 = vpack.c.bf16 %v1121_v7, %v1121_v7  ;;  %v2630_v26 = vld [vmem:[#allocation3] sm:$0xf]  ;;  %v2634_v44 = vld [vmem:[#allocation3 + $0x4] sm:$0xf] }
 0x218   : > { %v2644_v29 = vld [vmem:[#allocation3] sm:$0xf]  ;;  %v2648_v61 = vld [vmem:[#allocation3 + $0x4] sm:$0xf] }
 0x219   : > { %1130 = vst [vmem:[#allocation3 + $0x8] sm:$0xf] %v1126_v9 }
 0x21c   : > { %v1122_v16 = vpop.f32.mrf.mxu2 }
 0x21d   : > { %v2888_v10 = vld [vmem:[#allocation3 + $0xc] sm:$0xf0]  ;;  %v1123_v17 = vadd.f32 %v1122_v16, %v945_v5  ;;  %v2887_v18 = vld [vmem:[#allocation3 + $0x8] sm:$0xf0] }
 0x21e   : > { %v2885_v12 = vld [vmem:[#allocation3 + $0xc] sm:$0xf0]  ;;  %v2621_v13 = vor.u32 %v2888_v10, %v2620_v8  ;;  %v2884_v19 = vld [vmem:[#allocation3 + $0x8] sm:$0xf0]  ;;  %v2617_v23 = vor.u32 %v2887_v18, %v2616_v21 }
 0x21f   : > { %v2607_v14 = vor.u32 %v2885_v12, %v2606_v11  ;;  %v1128_v20 = vpack.c.bf16 %v1123_v17, %v1123_v17  ;;  %v2603_v24 = vor.u32 %v2884_v19, %v2602_v22  ;;  %v2890_v25 = vld [vmem:[#allocation3 + $0x8] sm:$0xf0]  ;;  %v2891_v43 = vld [vmem:[#allocation3 + $0xc] sm:$0xf0] }
 0x220   : > { %1270 = vrot.lane.b32.xlu2 %v2621_v13, %s3252_s15  ;;  %v2631_v27 = vor.u32 %v2890_v25, %v2630_v26  ;;  %v2893_v28 = vld [vmem:[#allocation3 + $0x8] sm:$0xf0]  ;;  %v2611_v31 = vld [vmem:[#allocation3 + $0x8] sm:$0xf]  ;;  %v2635_v45 = vor.u32 %v2891_v43, %v2634_v44  ;;  %v2894_v60 = vld [vmem:[#allocation3 + $0xc] sm:$0xf0] }
 0x221   : > { %v1158_v15 = vsel %vm1153_vm7, %v2607_v14, 0  ;;  %1132 = vst [vmem:[#allocation3 + $0x14] sm:$0xf] %v1128_v20  ;;  %v2645_v30 = vor.u32 %v2893_v28, %v2644_v29  ;;  %v2649_v62 = vor.u32 %v2894_v60, %v2648_v61 }
 0x222   : > { %1167 = vmatpush.bf16.xpose.msra.mxu3 %v1158_v15 }
 0x228   : > { %1263 = vrot.lane.b32.xlu2 %v2617_v23, %s3252_s15  ;;  %v2886_v32 = vld [vmem:[#allocation3 + $0x10] sm:$0xf0] }
 0x229   : > { %2608 = vmatmul.msk.bf16.vlgmr.msra.gmra.mxu3 %vm1153_vm7, %v2603_v24  ;;  %v2612_v33 = vor.u32 %v2886_v32, %v2611_v31 }
 0x22b   : > { %1240 = vmatpush.bf16.msrb.mxu3 %v2612_v33 }
 0x230   : > { %1390 = vrot.lane.b32.xlu2 %v2631_v27, %s3253_s22 }
 0x238   : > { %1517 = vrot.lane.b32.xlu2 %v2645_v30, %s3254_s26 }
 0x27a   : > { %v1271_v34 = vpop.permute.xlu2 %1270 }
 0x27b   : > { %v1276_v35 = vsel %vm1153_vm7, %v1271_v34, 0 }
 0x27c   : > { %1285 = vmatpush.bf16.xpose.msra.mxu3 %v1276_v35 }
 0x282   : > { %v1264_v56 = vpop.permute.xlu2 %1263 }
 0x28a   : > { %v1391_v59 = vpop.permute.xlu2 %1390 }
 0x292   : > { %v1518_v29 = vpop.permute.xlu2 %1517 }
 0x2ac   : > { %v1169_v37 = vpop.f32.mrf.mxu3 }
 0x2ad   : > { %v1170_v38 = vadd.f32 %v3603_v36, %v1169_v37 }
 0x2af   : > { %v1175_v39 = vsel %vm1174_vm8, %v1170_v38, -inf }
 0x2b0   : > { %1176 = vmax.xlane.f32.xlu0 %v1175_v39 }
 0x2b4   : > { %v1171_v40 = vpop.f32.mrf.mxu3 }
 0x2b5   : > { %v1172_v41 = vadd.f32 %v3603_v36, %v1171_v40 }
 0x2b7   : > { %v1178_v42 = vsel %vm1174_vm8, %v1172_v41, -inf }
 0x2b8   : > { %1179 = vmax.xlane.f32.xlu0 %v1178_v42 }
 0x2cc   : > { %1397 = vrot.lane.b32.xlu0 %v2635_v45, %s3253_s22 }
 0x323   : > { %v1177_v46 = vpop.xlane.xlu0 %1176 }
 0x324   : > { %v1181_v47 = vsub.f32 %v1170_v38, %v1177_v46 }
 0x326   : > { %v1183_v48 = vmul.f32 1.442695, %v1181_v47 }
 0x328   : > { %3065 = vpow2.f32 %v1183_v48 }
 0x32b   : > { %v1180_v49 = vpop.xlane.xlu0 %1179 }
 0x32c   : > { %v1182_v50 = vsub.f32 %v1172_v41, %v1180_v49 }
 0x32e   : > { %v3066_v51 = vpop.eup %3065  ;;  %v1185_v52 = vmul.f32 1.442695, %v1182_v50 }
 0x32f   : > { %v1187_v53 = vsel %vm1174_vm8, %v3066_v51, 0.0 }
 0x330   : > { %3067 = vpow2.f32 %v1185_v52  ;;  %1188 = vadd.xlane.f32.xlu1 %v1187_v53 }
 0x336   : > { %v3068_v54 = vpop.eup %3067 }
 0x337   : > { %v1190_v55 = vsel %vm1174_vm8, %v3068_v54, 0.0 }
 0x338   : > { %1191 = vadd.xlane.f32.xlu1 %v1190_v55 }
 0x33e   : > { %v1398_v57 = vpop.permute.xlu0 %1397 }
 0x33f   : > { %v1403_v58 = vsel %vm1153_vm7, %v1398_v57, 0 }
 0x340   : > { %1412 = vmatpush.bf16.xpose.msrb.mxu2 %v1403_v58 }
 0x347   : > { %2636 = vmatmul.msk.bf16.vlgmr.msrb.gmra.mxu2 %vm1153_vm7, %v1391_v59 }
 0x351   : > { %1524 = vrot.lane.b32.xlu1 %v2649_v62, %s3254_s26 }
 0x3a3   : > { %v1189_v63 = vpop.xlane.xlu1 %1188 }
 0x3a4   : > { %3069 = vrcp.f32 %v1189_v63  ;;  %v1204_v8 = vand.u32 2147483648, %v1189_v63  ;;  %vm1198_vm10 = vweird.f32 %v1189_v63  ;;  %v1202_v9 = vand.u32 2147483647, %v1189_v63 }
 0x3a6   : > { %v1205_v15 = vor.u32 1.1754944e-38, %v1204_v8  ;;  %vm1203_vm13 = vcmp.eq.f32.partialorder %v1202_v9, 8.507059e+37 }
 0x3aa   : > { %v3070_v0 = vpop.eup %3069 }
 0x3ab   : > { %v1194_v1 = vmul.f32 %v3070_v0, %v1189_v63  ;;  %v1192_v2 = vpop.xlane.xlu1 %1191  ;;  %vm1199_vm9 = vweird.f32 %v3070_v0 }
 0x3ac   : > { %3071 = vrcp.f32 %v1192_v2  ;;  %vm1200_vm11 = vmor %vm1198_vm10, %vm1199_vm9  ;;  %v1219_v11 = vand.u32 2147483648, %v1192_v2  ;;  %v1217_v14 = vand.u32 2147483647, %v1192_v2  ;;  %vm1213_vm14 = vweird.f32 %v1192_v2 }
 0x3ad   : > { %v1195_v3 = vsub.f32 1.0, %v1194_v1 }
 0x3ae   : > { %v1220_v17 = vor.u32 1.1754944e-38, %v1219_v11  ;;  %vm1218_vm0 = vcmp.eq.f32.partialorder %v1217_v14, 8.507059e+37 }
 0x3af   : > { %v1196_v4 = vmul.f32 %v3070_v0, %v1195_v3 }
 0x3b1   : > { %v1197_v6 = vadd.f32 %v3070_v0, %v1196_v4 }
 0x3b2   : > { %v3072_v5 = vpop.eup %3071 }
 0x3b3   : > { %v1209_v7 = vmul.f32 %v3072_v5, %v1192_v2  ;;  %v1201_v12 = vsel %vm1200_vm11, %v3070_v0, %v1197_v6  ;;  %vm1214_vm12 = vweird.f32 %v3072_v5 }
 0x3b4   : > { %vm1215_vm15 = vmor %vm1213_vm14, %vm1214_vm12  ;;  %v1206_v18 = vsel %vm1203_vm13, %v1205_v15, %v1201_v12  ;;  %v2639_v15 = vld [vmem:[#allocation3 + $0x8] sm:$0xf] }
 0x3b5   : > { %v1210_v10 = vsub.f32 1.0, %v1209_v7  ;;  %v1207_v21 = vmul.f32 %v3066_v51, %v1206_v18  ;;  %v2625_v18 = vld [vmem:[#allocation3 + $0x8] sm:$0xf] }
 0x3b7   : > { %v1211_v13 = vmul.f32 %v3072_v5, %v1210_v10 }
 0x3b9   : > { %v1212_v16 = vadd.f32 %v3072_v5, %v1211_v13 }
 0x3bb   : > { %v1216_v19 = vsel %vm1215_vm15, %v3072_v5, %v1212_v16  ;;  %v2892_v16 = vld [vmem:[#allocation3 + $0x10] sm:$0xf0] }
 0x3bc   : > { %v1221_v20 = vsel %vm1218_vm0, %v1220_v17, %v1216_v19  ;;  %v2640_v17 = vor.u32 %v2892_v16, %v2639_v15  ;;  %v2889_v19 = vld [vmem:[#allocation3 + $0x10] sm:$0xf0] }
 0x3bd   : > { %v1222_v22 = vmul.f32 %v3068_v54, %v1221_v20  ;;  %v2626_v20 = vor.u32 %v2889_v19, %v2625_v18 }
 0x3bf   : > { %v1223_v23 = vpack.c.bf16 %v1222_v22, %v1207_v21  ;;  %v2653_v21 = vld [vmem:[#allocation3 + $0x8] sm:$0xf]  ;;  %v2895_v22 = vld [vmem:[#allocation3 + $0x10] sm:$0xf0] }
 0x3c1   : > { %2613 = vmatmul.msk.bf16.vlgmr.msrb.gmra.mxu3 %vm1174_vm8, %v1223_v23  ;;  %v2654_v23 = vor.u32 %v2895_v22, %v2653_v21 }
 0x3c3   : > { %v1525_v24 = vpop.permute.xlu1 %1524 }
 0x3c4   : > { %v1530_v25 = vsel %vm1153_vm7, %v1525_v24, 0 }
 0x3c5   : > { %1539 = vmatpush.bf16.xpose.msrb.mxu3 %v1530_v25 }
 0x3ca   : > { %v1414_v26 = vpop.f32.mrf.mxu2 }
 0x3cb   : > { %v1415_v27 = vadd.f32 %v3603_v36, %v1414_v26 }
 0x3cd   : > { %v1419_v28 = vsel %vm1174_vm8, %v1415_v27, -inf }
 0x3ce   : > { %1420 = vmax.xlane.f32.xlu1 %v1419_v28 }
 0x3d1   : > { %2622 = vmatmul.msk.bf16.vlgmr.msra.gmra.mxu3 %vm1153_vm7, %v1264_v56 }
 0x3d2   : > { %v1416_v38 = vpop.f32.mrf.mxu2 }
 0x3d3   : > { %v1417_v39 = vadd.f32 %v3603_v36, %v1416_v38 }
 0x3d5   : > { %v1422_v43 = vsel %vm1174_vm8, %v1417_v39, -inf }
 0x3e1   : > { %2650 = vmatmul.msk.bf16.vlgmr.msrb.gmra.mxu3 %vm1153_vm7, %v1518_v29 }
 0x441   : > { %v1421_v44 = vpop.xlane.xlu1 %1420 }
 0x442   : > { %v1425_v47 = vsub.f32 %v1415_v27, %v1421_v44 }
 0x444   : > { %v1242_v30 = vpop.f32.mrf.mxu3  ;;  %v1427_v49 = vmul.f32 1.442695, %v1425_v47 }
 0x445   : > { %v1247_v31 = vpack.c.bf16 %v1242_v30, %v1242_v30 }
 0x446   : > { %3073 = vpow2.f32 %v1427_v49 }
 0x447   : > { %1250 = vst.msk [vmem:[#allocation4] sm:$0xf] %vm1249_vm1, %v1247_v31 }
 0x44c   : > { %v1244_v32 = vpop.f32.mrf.mxu3  ;;  %v3631_v53 = vpop.eup %3073 }
 0x44d   : > { %v1248_v33 = vpack.c.bf16 %v1244_v32, %v1244_v32  ;;  %v1431_v54 = vsel %vm1174_vm8, %v3631_v53, 0.0 }
 0x44f   : > { %1251 = vst.msk [vmem:[#allocation4 + $0x4] sm:$0xf] %vm1249_vm1, %v1248_v33 }
 0x454   : > { %v1287_v34 = vpop.f32.mrf.mxu3 }
 0x455   : > { %v1288_v35 = vadd.f32 %v3603_v36, %v1287_v34 }
 0x457   : > { %v1292_v37 = vsel %vm1174_vm8, %v1288_v35, -inf }
 0x458   : > { %1293 = vmax.xlane.f32.xlu2 %v1292_v37 }
 0x45c   : > { %v1289_v40 = vpop.f32.mrf.mxu3 }
 0x45d   : > { %v1290_v41 = vadd.f32 %v3603_v36, %v1289_v40 }
 0x45f   : > { %v1295_v42 = vsel %vm1174_vm8, %v1290_v41, -inf }
 0x460   : > { %1296 = vmax.xlane.f32.xlu0 %v1295_v42  ;;  %1423 = vmax.xlane.f32.xlu2 %v1422_v43 }
 0x464   : > { %v1541_v45 = vpop.f32.mrf.mxu3 }
 0x465   : > { %v1542_v46 = vadd.f32 %v3603_v36, %v1541_v45 }
 0x467   : > { %v1546_v48 = vsel %vm1174_vm8, %v1542_v46, -inf }
 0x468   : > { %1547 = vmax.xlane.f32.xlu0 %v1546_v48 }
 0x46c   : > { %v1543_v50 = vpop.f32.mrf.mxu3 }
 0x46d   : > { %v1544_v51 = vadd.f32 %v3603_v36, %v1543_v50 }
 0x46f   : > { %v1549_v52 = vsel %vm1174_vm8, %v1544_v51, -inf }
 0x470   : > { %1550 = vmax.xlane.f32.xlu2 %v1549_v52 }
 0x478   : > { %1432 = vadd.xlane.f32.xlu2 %v1431_v54 }
 0x4cb   : > { %v1294_v55 = vpop.xlane.xlu2 %1293 }
 0x4cc   : > { %v1298_v60 = vsub.f32 %v1288_v35, %v1294_v55 }
 0x4ce   : > { %v1300_v36 = vmul.f32 1.442695, %v1298_v60 }
 0x4d3   : > { %v1424_v56 = vpop.xlane.xlu2 %1423  ;;  %v1297_v57 = vpop.xlane.xlu0 %1296 }
 0x4d4   : > { %v1426_v58 = vsub.f32 %v1417_v39, %v1424_v56  ;;  %v1299_v59 = vsub.f32 %v1290_v41, %v1297_v57 }
 0x4d6   : > { %v1429_v61 = vmul.f32 1.442695, %v1426_v58  ;;  %v1302_v62 = vmul.f32 1.442695, %v1299_v59 }
 0x4d8   : > { %3075 = vpow2.f32 %v1429_v61 }
 0x4d9   : > { %3077 = vpow2.f32 %v1302_v62 }
 0x4da   : > { %3079 = vpow2.f32 %v1300_v36 }
 0x4db   : > { %v1548_v63 = vpop.xlane.xlu0 %1547 }
 0x4dc   : > { %v1552_v0 = vsub.f32 %v1542_v46, %v1548_v63 }
 0x4de   : > { %v3635_v1 = vpop.eup %3075  ;;  %v1554_v2 = vmul.f32 1.442695, %v1552_v0 }
 0x4df   : > { %v3637_v3 = vpop.eup %3077  ;;  %v1434_v4 = vsel %vm1174_vm8, %v3635_v1, 0.0 }
 0x4e0   : > { %3081 = vpow2.f32 %v1554_v2  ;;  %1435 = vadd.xlane.f32.xlu1 %v1434_v4  ;;  %v1307_v5 = vsel %vm1174_vm8, %v3637_v3, 0.0  ;;  %v3643_v7 = vpop.eup %3079 }
 0x4e1   : > { %1308 = vadd.xlane.f32.xlu0 %v1307_v5  ;;  %v1304_v11 = vsel %vm1174_vm8, %v3643_v7, 0.0 }
 0x4e3   : > { %v1551_v6 = vpop.xlane.xlu2 %1550 }
 0x4e4   : > { %v1553_v8 = vsub.f32 %v1544_v51, %v1551_v6 }
 0x4e6   : > { %v3645_v9 = vpop.eup %3081  ;;  %v1556_v10 = vmul.f32 1.442695, %v1553_v8 }
 0x4e7   : > { %v1558_v12 = vsel %vm1174_vm8, %v3645_v9, 0.0 }
 0x4e8   : > { %3083 = vpow2.f32 %v1556_v10  ;;  %1305 = vadd.xlane.f32.xlu1 %v1304_v11 }
 0x4e9   : > { %1559 = vadd.xlane.f32.xlu0 %v1558_v12 }
 0x4eb   : > { %v1433_v24 = vpop.xlane.xlu2 %1432 }
 0x4ec   : > { %3085 = vrcp.f32 %v1433_v24  ;;  %vm1442_vm4 = vweird.f32 %v1433_v24  ;;  %v1446_v51 = vand.u32 2147483647, %v1433_v24  ;;  %v1448_v52 = vand.u32 2147483648, %v1433_v24 }
 0x4ee   : > { %v3651_v13 = vpop.eup %3083  ;;  %v1449_v63 = vor.u32 1.1754944e-38, %v1448_v52  ;;  %vm1447_vm14 = vcmp.eq.f32.partialorder %v1446_v51, 8.507059e+37 }
 0x4ef   : > { %v1561_v14 = vsel %vm1174_vm8, %v3651_v13, 0.0 }
 0x4f0   : > { %1562 = vadd.xlane.f32.xlu2 %v1561_v14 }
 0x4f2   : > { %v3086_v26 = vpop.eup %3085 }
 0x4f3   : > { %v1438_v28 = vmul.f32 %v3086_v26, %v1433_v24  ;;  %vm1443_vm2 = vweird.f32 %v3086_v26 }
 0x4f4   : > { %vm3670_vm5 = vmor %vm1442_vm4, %vm1443_vm2 }
 0x4f5   : > { %v1439_v31 = vsub.f32 1.0, %v1438_v28 }
 0x4f7   : > { %v1440_v37 = vmul.f32 %v3086_v26, %v1439_v31 }
 0x4f9   : > { %v1441_v42 = vadd.f32 %v3086_v26, %v1440_v37 }
 0x4fb   : > { %v1445_v55 = vsel %vm3670_vm5, %v3086_v26, %v1441_v42 }
 0x4fc   : > { %v1450_v10 = vsel %vm1447_vm14, %v1449_v63, %v1445_v55  ;;  %v2904_v55 = vld [vmem:[%s3488_s13 + $0x38] sm:$0xff] }
 0x4fd   : > { %1473 = vrot.lane.b32.xlu0 %v2640_v17, %s3253_s22  ;;  %v1451_v19 = vmul.f32 %v3631_v53, %v1450_v10  ;;  %1709 = vmatpush.bf16.msrb.mxu1 %v2904_v55  ;;  %v3059_v10 = vld [vmem:[%s3953_s25] ss:$0 sm:$0xff]  ;;  %v2718_v55 = vld [vmem:[%s3512_s17 + $0x30] sm:$0xf] }
 0x501   : > { %1346 = vrot.lane.b32.xlu1 %v2626_v20, %s3252_s15 }
 0x508   : > { %1600 = vrot.lane.b32.xlu2 %v2654_v23, %s3254_s26 }
 0x553   : > { %v1436_v25 = vpop.xlane.xlu1 %1435 }
 0x554   : > { %3087 = vrcp.f32 %v1436_v25  ;;  %v3658_v27 = vpop.xlane.xlu0 %1308  ;;  %v1461_v46 = vand.u32 2147483647, %v1436_v25  ;;  %v1463_v47 = vand.u32 2147483648, %v1436_v25  ;;  %vm1457_vm6 = vweird.f32 %v1436_v25 }
 0x555   : > { %3089 = vrcp.f32 %v3658_v27  ;;  %v1336_v2 = vand.u32 2147483648, %v3658_v27  ;;  %vm1330_vm15 = vweird.f32 %v3658_v27  ;;  %v1334_v6 = vand.u32 2147483647, %v3658_v27 }
 0x556   : > { %vm1462_vm10 = vcmp.eq.f32.partialorder %v1461_v46, 8.507059e+37  ;;  %v1464_v58 = vor.u32 1.1754944e-38, %v1463_v47 }
 0x557   : > { %v1337_v17 = vor.u32 1.1754944e-38, %v1336_v2  ;;  %vm1335_vm2 = vcmp.eq.f32.partialorder %v1334_v6, 8.507059e+37 }
 0x55a   : > { %v3088_v29 = vpop.eup %3087 }
 0x55b   : > { %v3661_v30 = vpop.eup %3089  ;;  %v1453_v32 = vmul.f32 %v3088_v29, %v1436_v25  ;;  %v1306_v33 = vpop.xlane.xlu1 %1305  ;;  %vm1458_vm3 = vweird.f32 %v3088_v29 }
 0x55c   : > { %3091 = vrcp.f32 %v1306_v33  ;;  %v1326_v35 = vmul.f32 %v3661_v30, %v3658_v27  ;;  %v3665_v40 = vpop.xlane.xlu0 %1559  ;;  %vm3676_vm7 = vmor %vm1457_vm6, %vm1458_vm3  ;;  %vm1331_vm11 = vweird.f32 %v3661_v30  ;;  %v1321_v59 = vand.u32 2147483648, %v1306_v33 }
 0x55d   : > { %v1454_v34 = vsub.f32 1.0, %v1453_v32  ;;  %3093 = vrcp.f32 %v3665_v40  ;;  %vm1315_vm12 = vweird.f32 %v1306_v33  ;;  %v1319_v62 = vand.u32 2147483647, %v1306_v33  ;;  %vm1332_vm0 = vmor %vm1330_vm15, %vm1331_vm11 }
 0x55e   : > { %v1327_v39 = vsub.f32 1.0, %v1326_v35  ;;  %v1322_v11 = vor.u32 1.1754944e-38, %v1321_v59  ;;  %v2900_v59 = vld [vmem:[%s3488_s13 + $0x18] sm:$0xff] }
 0x55f   : > { %v1455_v38 = vmul.f32 %v3088_v29, %v1454_v34  ;;  %vm1320_vm1 = vcmp.eq.f32.partialorder %v1319_v62, 8.507059e+37  ;;  %v2897_v62 = vld [vmem:[%s3488_s13] sm:$0xff] }
 0x560   : > { %v1328_v49 = vmul.f32 %v3661_v30, %v1327_v39 }
 0x561   : > { %v1456_v43 = vadd.f32 %v3088_v29, %v1455_v38 }
 0x562   : > { %v3092_v41 = vpop.eup %3091  ;;  %v1329_v60 = vadd.f32 %v3661_v30, %v1328_v49 }
 0x563   : > { %v1311_v44 = vmul.f32 %v3092_v41, %v1306_v33  ;;  %v3667_v45 = vpop.xlane.xlu2 %1562  ;;  %v1460_v56 = vsel %vm3676_vm7, %v3088_v29, %v1456_v43  ;;  %vm1316_vm9 = vweird.f32 %v3092_v41  ;;  %v3094_v36 = vpop.eup %3093  ;;  %v1575_v33 = vand.u32 2147483648, %v3665_v40 }
 0x564   : > { %3095 = vrcp.f32 %v3667_v45  ;;  %v1465_v0 = vsel %vm1462_vm10, %v1464_v58, %v1460_v56  ;;  %vm3687_vm13 = vmor %vm1315_vm12, %vm1316_vm9  ;;  %v1333_v15 = vsel %vm1332_vm0, %v3661_v30, %v1329_v60  ;;  %v1565_v16 = vmul.f32 %v3094_v36, %v3665_v40  ;;  %v2903_v56 = vld [vmem:[%s3488_s13 + $0x30] sm:$0xff]  ;;  %v2901_v58 = vld [vmem:[%s3488_s13 + $0x20] sm:$0xff] }
 0x565   : > { %v1312_v50 = vsub.f32 1.0, %v1311_v44  ;;  %v1466_v14 = vmul.f32 %v3635_v1, %v1465_v0  ;;  %v1338_v22 = vsel %vm1335_vm2, %v1337_v17, %v1333_v15  ;;  %v1590_v31 = vand.u32 2147483648, %v3667_v45  ;;  %1710 = vmatpush.bf16.msrb.mxu1 %v2903_v56  ;;  %v2899_v60 = vld [vmem:[%s3488_s13 + $0x10] sm:$0xff]  ;;  %v2912_v56 = vld [vmem:[%s3512_s17 + $0x34] sm:$0xf0] }
 0x566   : > { %v1566_v23 = vsub.f32 1.0, %v1565_v16  ;;  %v1339_v27 = vmul.f32 %v3637_v3, %v1338_v22  ;;  %vm1570_vm4 = vweird.f32 %v3094_v36  ;;  %vm1584_vm5 = vweird.f32 %v3667_v45 }
 0x567   : > { %v1313_v57 = vmul.f32 %v3092_v41, %v1312_v50  ;;  %v1467_v24 = vpack.c.bf16 %v1466_v14, %v1451_v19  ;;  %vm1569_vm7 = vweird.f32 %v3665_v40  ;;  %v1573_v3 = vand.u32 2147483647, %v3665_v40 }
 0x568   : > { %v1567_v29 = vmul.f32 %v3094_v36, %v1566_v23  ;;  %vm1571_vm9 = vmor %vm1569_vm7, %vm1570_vm4  ;;  %v1591_v35 = vor.u32 1.1754944e-38, %v1590_v31  ;;  %v1576_v38 = vor.u32 1.1754944e-38, %v1575_v33  ;;  %vm1503_vm12 = vcmask 781824   ;;  %v2920_v33 = vld [vmem:[%s3512_s17 + $0x74] sm:$0xf0] }
 0x569   : > { %v1314_v61 = vadd.f32 %v3092_v41, %v1313_v57  ;;  %vm1574_vm11 = vcmp.eq.f32.partialorder %v1573_v3, 8.507059e+37  ;;  %v2902_v57 = vld [vmem:[%s3488_s13 + $0x28] sm:$0xff]  ;;  %v2919_v3 = vld [vmem:[%s3512_s17 + $0x74] sm:$0xf] }
 0x56a   : > { %v3096_v5 = vpop.eup %3095  ;;  %v1568_v32 = vadd.f32 %v3094_v36, %v1567_v29  ;;  %1711 = vmatpush.bf16.msrb.mxu1 %v2902_v57  ;;  %v2911_v57 = vld [vmem:[%s3512_s17 + $0x34] sm:$0xf] }
 0x56b   : > { %v1318_v8 = vsel %vm3687_vm13, %v3092_v41, %v1314_v61  ;;  %v1580_v12 = vmul.f32 %v3096_v5, %v3667_v45  ;;  %v1601_v28 = vpop.permute.xlu2 %1600  ;;  %vm1585_vm3 = vweird.f32 %v3096_v5  ;;  %v2898_v61 = vld [vmem:[%s3488_s13 + $0x8] sm:$0xff]  ;;  %vm1630_vm13 = vcmask 1044224  }
 0x56c   : > { %v1323_v18 = vsel %vm1320_vm1, %v1322_v11, %v1318_v8  ;;  %vm1586_vm6 = vmor %vm1584_vm5, %vm1585_vm3  ;;  %v1572_v37 = vsel %vm1571_vm9, %v3094_v36, %v1568_v32  ;;  %v907_v8 = vld [vmem:[#allocation2] sm:$0xff]  }
 0x56d   : > { %v1581_v20 = vsub.f32 1.0, %v1580_v12  ;;  %v1324_v25 = vmul.f32 %v3643_v7, %v1323_v18  ;;  %v1588_v7 = vand.u32 2147483647, %v3667_v45  ;;  %v1577_v41 = vsel %vm1574_vm11, %v1576_v38, %v1572_v37  ;;  %v2742_v38 = vld [vmem:[%s3512_s17 + $0x60] sm:$0xf] }
 0x56e   : > { %v1578_v43 = vmul.f32 %v3645_v9, %v1577_v41  ;;  %1712 = vmatpush.bf16.msrb.mxu1 %v2901_v58  ;;  %v1723_v11 = vunpack.c.l.bf16 %v907_v8  ;;  %v1724_v16 = vunpack.c.h.bf16 %v907_v8  ;;  %v2917_v41 = vld [vmem:[%s3512_s17 + $0x64] sm:$0xf]  ;;  %v2719_v58 = vor.u32 %v2912_v56, %v2718_v55  ;;  %v2923_v55 = vld [vmem:[%s3451_s16 + $0x10] sm:$0xff] }
 0x56f   : > { %v1474_v21 = vpop.permute.xlu0 %1473  ;;  %v1582_v26 = vmul.f32 %v3096_v5, %v1581_v20  ;;  %v1340_v53 = vpack.c.bf16 %v1339_v27, %v1324_v25  ;;  %vm1589_vm10 = vcmp.eq.f32.partialorder %v1588_v7, 8.507059e+37  ;;  %v3255_v20 = vmov 128.0   ;;  %v2750_v7 = vld [vmem:[%s3512_s17 + $0x70] sm:$0xf]  ;;  %v2931_v56 = vld [vmem:[%s3451_s16 + $0x50] sm:$0xff] }
 0x570   : > { %1486 = vmatpush.bf16.msra.mxu2 %v1474_v21  ;;  %3097 = vrcp.f32 %v3255_v20 }
 0x571   : > { %v1583_v30 = vadd.f32 %v3096_v5, %v1582_v26 }
 0x572   : > { %1713 = vmatpush.bf16.msrb.mxu1 %v2900_v59  ;;  %v2720_v59 = vld [vmem:[%s3512_s17 + $0x38] sm:$0xf0] }
 0x573   : > { %2641 = vmatmul.msk.bf16.vlgmr.msra.gmra.mxu2 %vm1174_vm8, %v1467_v24  ;;  %v1347_v1 = vpop.permute.xlu1 %1346  ;;  %v1587_v34 = vsel %vm1586_vm6, %v3096_v5, %v1583_v30 }
 0x574   : > { %1359 = vmatpush.bf16.msrb.mxu0 %v1347_v1  ;;  %v1592_v39 = vsel %vm1589_vm10, %v1591_v35, %v1587_v34  ;;  %v2751_v34 = vor.u32 %v2920_v33, %v2750_v7  ;;  %v2752_v35 = vld [vmem:[%s3512_s17 + $0x78] sm:$0xf0] }
 0x575   : > { %v1593_v42 = vmul.f32 %v3651_v13, %v1592_v39  ;;  %v2755_v37 = vor.u32 %v2919_v3, %v2752_v35  ;;  %v2918_v39 = vld [vmem:[%s3512_s17 + $0x64] sm:$0xf0] }
 0x576   : > { %1714 = vmatpush.bf16.msrb.mxu1 %v2899_v60  ;;  %v3098_v21 = vpop.eup %3097  ;;  %1889 = vmatpush.bf16.msrb.mxu2 %v2751_v34  ;;  %v2723_v60 = vor.u32 %v2911_v57, %v2720_v59  ;;  %v2922_v57 = vld [vmem:[%s3451_s16 + $0x8] sm:$0xff]  ;;  %v1803_v59 = vld [vmem:[%s3517_s11] sm:$0x3] }
 0x577   : > { %2627 = vmatmul.msk.bf16.vlgmr.msrb.gmra.mxu0 %vm1174_vm8, %v1340_v53  ;;  %v1594_v44 = vpack.c.bf16 %v1593_v42, %v1578_v43  ;;  %v1734_v22 = vmul.f32 128.0, %v3098_v21  ;;  %vm1738_vm14 = vweird.f32 %v3098_v21  ;;  %1903 = vmatpush.bf16.msra.mxu3 %v2755_v37  ;;  %v2743_v42 = vor.u32 %v2918_v39, %v2742_v38  ;;  %v2744_v43 = vld [vmem:[%s3512_s17 + $0x68] sm:$0xf0]  ;;  %v3060_v38 = vld [vmem:[%s3955_s29] ss:$0 sm:$0xff] }
 0x578   : > { %1613 = vmatpush.bf16.msra.mxu0 %v1601_v28 }
 0x579   : > { %v1735_v23 = vsub.f32 1.0, %v1734_v22 }
 0x57a   : > { %1715 = vmatpush.bf16.msrb.mxu1 %v2898_v61  ;;  %1890 = vmatpush.bf16.msrb.mxu2 %v2743_v42  ;;  %v2710_v61 = vld [vmem:[%s3512_s17 + $0x20] sm:$0xf] }
 0x57b   : > { %v1736_v24 = vmul.f32 %v3098_v21, %v1735_v23 }
 0x57d   : > { %v1737_v25 = vadd.f32 %v3098_v21, %v1736_v24 }
 0x57e   : > { %1716 = vmatpush.bf16.msrb.mxu1 %v2897_v62  ;;  %v2910_v62 = vld [vmem:[%s3512_s17 + $0x24] sm:$0xf0] }
 0x57f   : > { %v3734_v26 = vsel %vm1738_vm14, %v3098_v21, %v1737_v25 }
 0x587   : > { %2655 = vmatmul.msk.bf16.vlgmr.msra.gmra.mxu0 %vm1174_vm8, %v1594_v44  ;;  %vm1376_vm8 = vcmask 519424   ;;  %v2747_v44 = vor.u32 %v2917_v41, %v2744_v43 }
 0x589   : > { %1904 = vmatpush.bf16.msra.mxu3 %v2747_v44 }
 0x5f4   : > { %v1361_v45 = vpop.f32.mrf.mxu0 }
 0x5f5   : > { %v1366_v46 = vpack.c.bf16 %v1361_v45, %v1361_v45  ;;  %v2734_v45 = vld [vmem:[%s3512_s17 + $0x50] sm:$0xf] }
 0x5f6   : > { %v1488_v47 = vpop.f32.mrf.mxu2 }
 0x5f7   : > { %v1493_v40 = vpack.c.bf16 %v1488_v47, %v1488_v47  ;;  %1370 = vrot.lane.b32.xlu0 %v1366_v46, %s3254_s26  ;;  %v2916_v46 = vld [vmem:[%s3512_s17 + $0x54] sm:$0xf0]  ;;  %v2915_v47 = vld [vmem:[%s3512_s17 + $0x54] sm:$0xf] }
 0x5f9   : > { %1497 = vrot.lane.b32.xlu2 %v1493_v40, %s3253_s22  ;;  %v2735_v40 = vor.u32 %v2916_v46, %v2734_v45 }
 0x5fb   : > { %1891 = vmatpush.bf16.msrb.mxu2 %v2735_v40  ;;  %v2936_v40 = vld [vmem:[%s3451_s16 + $0x78] sm:$0xff] }
 0x5fc   : > { %v1363_v48 = vpop.f32.mrf.mxu0  ;;  %2101 = vmatpush.bf16.msra.mxu1 %v2936_v40 }
 0x5fd   : > { %v1367_v49 = vpack.c.bf16 %v1363_v48, %v1363_v48  ;;  %v2736_v48 = vld [vmem:[%s3512_s17 + $0x58] sm:$0xf0] }
 0x5fe   : > { %v1490_v50 = vpop.f32.mrf.mxu2 }
 0x5ff   : > { %v1494_v13 = vpack.c.bf16 %v1490_v50, %v1490_v50  ;;  %1372 = vrot.lane.b32.xlu1 %v1367_v49, %s3254_s26  ;;  %v2739_v49 = vor.u32 %v2915_v47, %v2736_v48  ;;  %v2726_v50 = vld [vmem:[%s3512_s17 + $0x40] sm:$0xf]  ;;  %v2927_v48 = vld [vmem:[%s3451_s16 + $0x30] sm:$0xff] }
 0x601   : > { %1499 = vrot.lane.b32.xlu0 %v1494_v13, %s3253_s22  ;;  %1905 = vmatpush.bf16.msra.mxu3 %v2739_v49  ;;  %v2914_v13 = vld [vmem:[%s3512_s17 + $0x44] sm:$0xf0]  ;;  %v2935_v49 = vld [vmem:[%s3451_s16 + $0x70] sm:$0xff] }
 0x602   : > { %2102 = vmatpush.bf16.msra.mxu1 %v2935_v49 }
 0x604   : > { %v1615_v9 = vpop.f32.mrf.mxu0 }
 0x605   : > { %v1620_v51 = vpack.c.bf16 %v1615_v9, %v1615_v9  ;;  %v2913_v9 = vld [vmem:[%s3512_s17 + $0x44] sm:$0xf] }
 0x607   : > { %1624 = vrot.lane.b32.xlu1 %v1620_v51, %s3252_s15  ;;  %v2727_v51 = vor.u32 %v2914_v13, %v2726_v50  ;;  %v2926_v50 = vld [vmem:[%s3451_s16 + $0x28] sm:$0xff] }
 0x608   : > { %v2934_v13 = vld [vmem:[%s3451_s16 + $0x68] sm:$0xff] }
 0x609   : > { %1892 = vmatpush.bf16.msrb.mxu2 %v2727_v51  ;;  %2103 = vmatpush.bf16.msra.mxu1 %v2934_v13  ;;  %v2933_v51 = vld [vmem:[%s3451_s16 + $0x60] sm:$0xff] }
 0x60c   : > { %v1617_v52 = vpop.f32.mrf.mxu0 }
 0x60d   : > { %v1621_v54 = vpack.c.bf16 %v1617_v52, %v1617_v52  ;;  %v2728_v52 = vld [vmem:[%s3512_s17 + $0x48] sm:$0xf0]  ;;  %1893 = vmatpush.bf16.msrb.mxu2 %v2719_v58  ;;  %2104 = vmatpush.bf16.msra.mxu1 %v2933_v51  ;;  %v2930_v58 = vld [vmem:[%s3451_s16 + $0x48] sm:$0xff] }
 0x60f   : > { %1626 = vrot.lane.b32.xlu2 %v1621_v54, %s3252_s15  ;;  %v2731_v54 = vor.u32 %v2913_v9, %v2728_v52  ;;  %v2925_v9 = vld [vmem:[%s3451_s16 + $0x20] sm:$0xff]  ;;  %v2924_v52 = vld [vmem:[%s3451_s16 + $0x18] sm:$0xff] }
 0x611   : > { %1906 = vmatpush.bf16.msra.mxu3 %v2731_v54  ;;  %v2932_v54 = vld [vmem:[%s3451_s16 + $0x58] sm:$0xff] }
 0x612   : > { %2105 = vmatpush.bf16.msra.mxu1 %v2932_v54 }
 0x615   : > { %1907 = vmatpush.bf16.msra.mxu3 %v2723_v60  ;;  %v1805_v60 = vperm.slane %v1803_v59, 0 }
 0x616   : > { %2106 = vmatpush.bf16.msra.mxu1 %v2931_v56 }
 0x61a   : > { %2107 = vmatpush.bf16.msra.mxu1 %v2930_v58 }
 0x653   : > { %v1498_v63 = vpop.permute.xlu2 %1497 }
 0x669   : > { %v1371_v36 = vpop.permute.xlu0 %1370  ;;  %v1627_v4 = vpop.permute.xlu2 %1626 }
 0x66a   : > { %1377 = vst.msk [vmem:[#allocation4] sm:$0xf] %vm1376_vm8, %v1371_v36  ;;  %v2909_v36 = vld [vmem:[%s3512_s17 + $0x24] sm:$0xf] }
 0x66b   : > { %1504 = vst.msk [vmem:[#allocation4] sm:$0xf] %vm1503_vm12, %v1498_v63  ;;  %v2711_v63 = vor.u32 %v2910_v62, %v2710_v61  ;;  %v1806_v61 = vperm.slane %v1803_v59, 1  ;;  %v2921_v62 = vld [vmem:[%s3451_s16] sm:$0xff] }
 0x66d   : > { %1894 = vmatpush.bf16.msrb.mxu2 %v2711_v63 }
 0x671   : > { %v1373_v0 = vpop.permute.xlu1 %1372 }
 0x672   : > { %1378 = vst.msk [vmem:[#allocation4 + $0x4] sm:$0xf] %vm1376_vm8, %v1373_v0  ;;  %v2712_v0 = vld [vmem:[%s3512_s17 + $0x28] sm:$0xf0] }
 0x673   : > { %v1500_v2 = vpop.permute.xlu0 %1499 }
 0x674   : > { %1505 = vst.msk [vmem:[#allocation4 + $0x4] sm:$0xf] %vm1503_vm12, %v1500_v2  ;;  %v2715_v2 = vor.u32 %v2909_v36, %v2712_v0  ;;  %v2929_v36 = vld [vmem:[%s3451_s16 + $0x40] sm:$0xff] }
 0x675   : > { %1632 = vst.msk [vmem:[#allocation4 + $0x4] sm:$0xf] %vm1630_vm13, %v1627_v4  ;;  %v2702_v4 = vld [vmem:[%s3512_s17 + $0x10] sm:$0xf]  ;;  %2108 = vmatpush.bf16.msra.mxu1 %v2929_v36 }
 0x676   : > { %1908 = vmatpush.bf16.msra.mxu3 %v2715_v2 }
 0x679   : > { %v1625_v5 = vpop.permute.xlu1 %1624 }
 0x67a   : > { %1631 = vst.msk [vmem:[#allocation4] sm:$0xf] %vm1630_vm13, %v1625_v5  ;;  %v2908_v5 = vld [vmem:[%s3512_s17 + $0x14] sm:$0xf0] }
 0x681   : > { %v2896_v6 = vld [vmem:[#allocation4] sm:$0xff] }
 0x682   : > { %1717 = vmatmul.bf16.vlgmr.msrb.gmra.mxu1 %v2896_v6  ;;  %v2907_v6 = vld [vmem:[%s3512_s17 + $0x14] sm:$0xf] }
 0x6ff   : > { %v1718_v12 = vpop.f32.mrf.mxu1 }
 0x700   : > { %v1719_v14 = vadd.f32 %v3059_v10, %v1718_v12  ;;  %v2694_v12 = vld [vmem:[%s3512_s17] sm:$0xf] }
 0x702   : > { %v1725_v15 = vadd.f32 %v1723_v11, %v1719_v14  ;;  %v2704_v11 = vld [vmem:[%s3512_s17 + $0x18] sm:$0xf0]  ;;  %v2906_v14 = vld [vmem:[%s3512_s17 + $0x4] sm:$0xf0] }
 0x704   : > { %1729 = vadd.xlane.f32.xlu0 %v1725_v15 }
 0x707   : > { %v1720_v17 = vpop.f32.mrf.mxu1 }
 0x708   : > { %v1721_v18 = vadd.f32 %v3059_v10, %v1720_v17  ;;  %v2703_v10 = vor.u32 %v2908_v5, %v2702_v4  ;;  %v2905_v17 = vld [vmem:[%s3512_s17 + $0x4] sm:$0xf] }
 0x70a   : > { %v1726_v19 = vadd.f32 %v1724_v16, %v1721_v18  ;;  %v2707_v16 = vor.u32 %v2907_v6, %v2704_v11  ;;  %v2696_v18 = vld [vmem:[%s3512_s17 + $0x8] sm:$0xf0]  ;;  %1895 = vmatpush.bf16.msrb.mxu2 %v2703_v10 }
 0x70b   : > { %v2699_v21 = vor.u32 %v2905_v17, %v2696_v18 }
 0x70c   : > { %1731 = vadd.xlane.f32.xlu1 %v1726_v19  ;;  %1909 = vmatpush.bf16.msra.mxu3 %v2707_v16 }
 0x710   : > { %1910 = vmatpush.bf16.msra.mxu3 %v2699_v21 }
 0x777   : > { %v1730_v1 = vpop.xlane.xlu0 %1729 }
 0x778   : > { %v1740_v27 = vmul.f32 %v3734_v26, %v1730_v1 }
 0x77a   : > { %v3737_v28 = vsub.f32 %v1725_v15, %v1740_v27 }
 0x77c   : > { %v1744_v29 = vmul.f32 %v3737_v28, %v3737_v28 }
 0x77e   : > { %1746 = vadd.xlane.f32.xlu2 %v1744_v29 }
 0x77f   : > { %v1732_v53 = vpop.xlane.xlu1 %1731 }
 0x780   : > { %v1741_v30 = vmul.f32 %v3734_v26, %v1732_v53 }
 0x782   : > { %v3742_v31 = vsub.f32 %v1726_v19, %v1741_v30  ;;  %v2695_v19 = vor.u32 %v2906_v14, %v2694_v12 }
 0x784   : > { %v1745_v32 = vmul.f32 %v3742_v31, %v3742_v31  ;;  %1896 = vmatpush.bf16.msrb.mxu2 %v2695_v19 }
 0x786   : > { %1748 = vadd.xlane.f32.xlu0 %v1745_v32 }
 0x7f1   : > { %v1747_v8 = vpop.xlane.xlu2 %1746 }
 0x7f2   : > { %v1750_v15 = vmul.f32 %v1747_v8, %v3734_v26 }
 0x7f4   : > { %v1752_v20 = vadd.f32 1e-12, %v1750_v15 }
 0x7f6   : > { %3099 = vrsqrt.f32 %v1752_v20  ;;  %vm1760_vm0 = vweird.f32 %v1752_v20 }
 0x7f9   : > { %v1749_v22 = vpop.xlane.xlu0 %1748 }
 0x7fa   : > { %v1751_v23 = vmul.f32 %v1749_v22, %v3734_v26 }
 0x7fc   : > { %v3100_v24 = vpop.eup %3099  ;;  %v1753_v25 = vadd.f32 1e-12, %v1751_v23 }
 0x7fd   : > { %v1755_v1 = vmul.f32 %v3100_v24, %v1752_v20  ;;  %vm1761_vm15 = vweird.f32 %v3100_v24 }
 0x7fe   : > { %3101 = vrsqrt.f32 %v1753_v25  ;;  %vm1762_vm1 = vmor %vm1760_vm0, %vm1761_vm15  ;;  %vm1770_vm3 = vweird.f32 %v1753_v25 }
 0x7ff   : > { %v1756_v27 = vmul.f32 %v3100_v24, %v1755_v1 }
 0x801   : > { %v1757_v29 = vmul.f32 0.5, %v1756_v27 }
 0x803   : > { %v1758_v53 = vsub.f32 1.5, %v1757_v29 }
 0x804   : > { %v3102_v30 = vpop.eup %3101 }
 0x805   : > { %v1759_v32 = vmul.f32 %v3100_v24, %v1758_v53  ;;  %v1765_v7 = vmul.f32 %v3102_v30, %v1753_v25  ;;  %vm1771_vm2 = vweird.f32 %v3102_v30 }
 0x806   : > { %vm1772_vm4 = vmor %vm1770_vm3, %vm1771_vm2 }
 0x807   : > { %v1766_v33 = vmul.f32 %v3102_v30, %v1765_v7  ;;  %v1763_v3 = vsel %vm1762_vm1, %v3100_v24, %v1759_v32 }
 0x808   : > { %v1774_v37 = vmul.f32 %v1763_v3, %v3737_v28  ;;  %v3061_v28 = vld [vmem:[%s3957_s9] ss:$0 sm:$0xff] }
 0x809   : > { %v1767_v34 = vmul.f32 0.5, %v1766_v33 }
 0x80a   : > { %v1779_v43 = vmul.f32 %v3060_v38, %v1774_v37 }
 0x80b   : > { %v1768_v35 = vsub.f32 1.5, %v1767_v34 }
 0x80c   : > { %v3792_v45 = vadd.f32 %v3061_v28, %v1779_v43 }
 0x80d   : > { %v1769_v39 = vmul.f32 %v3102_v30, %v1768_v35 }
 0x80f   : > { %v1773_v41 = vsel %vm1772_vm4, %v3102_v30, %v1769_v39 }
 0x810   : > { %v1775_v42 = vmul.f32 %v1773_v41, %v3742_v31  ;;  %v2928_v31 = vld [vmem:[%s3451_s16 + $0x38] sm:$0xff] }
 0x811   : > { %2087 = vmatpush.bf16.msrb.mxu0 %v2928_v31 }
 0x812   : > { %v1780_v44 = vmul.f32 %v3060_v38, %v1775_v42 }
 0x814   : > { %v3794_v46 = vadd.f32 %v3061_v28, %v1780_v44 }
 0x815   : > { %2088 = vmatpush.bf16.msrb.mxu0 %v2927_v48 }
 0x816   : > { %v1786_v47 = vpack.c.bf16 %v3794_v46, %v3792_v45 }
 0x818   : > { %1897 = vmatmul.bf16.vlgmr.msrb.gmra.mxu2 %v1786_v47  ;;  %1911 = vmatmul.bf16.vlgmr.msra.gmra.mxu3 %v1786_v47 }
 0x819   : > { %2089 = vmatpush.bf16.msrb.mxu0 %v2926_v50  ;;  %v3062_v50 = vld [vmem:[%s825_s1] ss:$0 sm:$0xff] }
 0x81d   : > { %2090 = vmatpush.bf16.msrb.mxu0 %v2925_v9 }
 0x821   : > { %2091 = vmatpush.bf16.msrb.mxu0 %v2924_v52 }
 0x825   : > { %2092 = vmatpush.bf16.msrb.mxu0 %v2923_v55 }
 0x829   : > { %2093 = vmatpush.bf16.msrb.mxu0 %v2922_v57 }
 0x82d   : > { %2094 = vmatpush.bf16.msrb.mxu0 %v2921_v62 }
 0x89b   : > { %v1898_v63 = vpop.f32.mrf.mxu2  ;;  %v1912_v0 = vpop.f32.mrf.mxu3 }
 0x89c   : > { %v1899_v2 = vadd.f32 %v1898_v63, %v1805_v60  ;;  %v1913_v4 = vadd.f32 %v1912_v0, %v1806_v61 }
 0x89e   : > { %v1921_v5 = vmul.f32 0.044715, %v1899_v2  ;;  %v1922_v6 = vmul.f32 0.044715, %v1913_v4  ;;  %v1917_v38 = vmul.f32 0.5, %v1899_v2  ;;  %v1918_v42 = vmul.f32 0.5, %v1913_v4 }
 0x8a0   : > { %v1925_v8 = vmul.f32 %v1921_v5, %v1899_v2  ;;  %v1926_v10 = vmul.f32 %v1922_v6, %v1913_v4 }
 0x8a2   : > { %v1929_v11 = vmul.f32 %v1925_v8, %v1899_v2  ;;  %v1930_v12 = vmul.f32 %v1926_v10, %v1913_v4 }
 0x8a3   : > { %v1900_v14 = vpop.f32.mrf.mxu2  ;;  %v1914_v15 = vpop.f32.mrf.mxu3 }
 0x8a4   : > { %v1933_v16 = vadd.f32 %v1929_v11, %v1899_v2  ;;  %v1901_v17 = vadd.f32 %v1900_v14, %v1805_v60  ;;  %v1915_v18 = vadd.f32 %v1914_v15, %v1806_v61  ;;  %v1934_v19 = vadd.f32 %v1930_v12, %v1913_v4 }
 0x8a6   : > { %v1923_v20 = vmul.f32 0.044715, %v1901_v17  ;;  %v1924_v21 = vmul.f32 0.044715, %v1915_v18  ;;  %v1937_v22 = vmul.f32 0.7978846, %v1933_v16 }
 0x8a7   : > { %v1938_v24 = vmul.f32 0.7978846, %v1934_v19  ;;  %v1919_v39 = vmul.f32 0.5, %v1901_v17  ;;  %v1920_v43 = vmul.f32 0.5, %v1915_v18 }
 0x8a8   : > { %v1927_v23 = vmul.f32 %v1923_v20, %v1901_v17  ;;  %v1928_v25 = vmul.f32 %v1924_v21, %v1915_v18  ;;  %3103 = vtanh.f32 %v1937_v22  ;;  %v3063_v20 = vld [vmem:[%s828_s14] ss:$0 sm:$0xff] }
 0x8a9   : > { %3105 = vtanh.f32 %v1938_v24  ;;  %v3064_v22 = vld [vmem:[%s831_s8] ss:$0 sm:$0xff] }
 0x8aa   : > { %v1931_v1 = vmul.f32 %v1927_v23, %v1901_v17  ;;  %v1932_v27 = vmul.f32 %v1928_v25, %v1915_v18 }
 0x8ac   : > { %v1935_v29 = vadd.f32 %v1931_v1, %v1901_v17  ;;  %v1936_v53 = vadd.f32 %v1932_v27, %v1915_v18 }
 0x8ae   : > { %v1939_v30 = vmul.f32 0.7978846, %v1935_v29  ;;  %v1940_v32 = vmul.f32 0.7978846, %v1936_v53  ;;  %v3104_v7 = vpop.eup %3103 }
 0x8af   : > { %v3106_v33 = vpop.eup %3105  ;;  %v1945_v3 = vadd.f32 1.0, %v3104_v7 }
 0x8b0   : > { %3107 = vtanh.f32 %v1939_v30  ;;  %v1946_v35 = vadd.f32 1.0, %v3106_v33 }
 0x8b1   : > { %3109 = vtanh.f32 %v1940_v32  ;;  %v1949_v44 = vmul.f32 %v1945_v3, %v1917_v38 }
 0x8b2   : > { %v1950_v31 = vmul.f32 %v1946_v35, %v1918_v42 }
 0x8b6   : > { %v3108_v34 = vpop.eup %3107 }
 0x8b7   : > { %v3110_v37 = vpop.eup %3109  ;;  %v1947_v41 = vadd.f32 1.0, %v3108_v34 }
 0x8b8   : > { %v1948_v28 = vadd.f32 1.0, %v3110_v37 }
 0x8b9   : > { %v1951_v47 = vmul.f32 %v1947_v41, %v1919_v39 }
 0x8ba   : > { %v1952_v40 = vmul.f32 %v1948_v28, %v1920_v43 }
 0x8bb   : > { %v1953_v48 = vpack.c.bf16 %v1951_v47, %v1949_v44 }
 0x8bc   : > { %v1954_v49 = vpack.c.bf16 %v1952_v40, %v1950_v31 }
 0x8bd   : > { %2095 = vmatmul.bf16.vlgmr.msrb.gmra.mxu0 %v1953_v48 }
 0x8be   : > { %2109 = vmatmul.bf16.vlgmr.msra.gmra.mxu1 %v1954_v49 }
 0x93a   : > { %v2096_v13 = vpop.f32.mrf.mxu0 }
 0x93b   : > { %v2097_v9 = vadd.f32 %v3062_v50, %v2096_v13  ;;  %v2110_v51 = vpop.f32.mrf.mxu1 }
 0x93d   : > { %v2111_v52 = vadd.f32 %v2110_v51, %v2097_v9 }
 0x93f   : > { %v2115_v54 = vadd.f32 %v2111_v52, %v3792_v45 }
 0x941   : > { %2119 = vadd.xlane.f32.xlu1 %v2115_v54 }
 0x942   : > { %v2098_v55 = vpop.f32.mrf.mxu0 }
 0x943   : > { %v2099_v56 = vadd.f32 %v3062_v50, %v2098_v55  ;;  %v2112_v57 = vpop.f32.mrf.mxu1 }
 0x945   : > { %v2113_v58 = vadd.f32 %v2112_v57, %v2099_v56 }
 0x947   : > { %v2116_v59 = vadd.f32 %v2113_v58, %v3794_v46 }
 0x949   : > { %2121 = vadd.xlane.f32.xlu2 %v2116_v59 }
 0x9b4   : > { %v2120_v60 = vpop.xlane.xlu1 %2119 }
 0x9b5   : > { %v2123_v61 = vmul.f32 %v2120_v60, %v3734_v26 }
 0x9b7   : > { %v2125_v62 = vsub.f32 %v2115_v54, %v2123_v61 }
 0x9b9   : > { %v2127_v36 = vmul.f32 %v2125_v62, %v2125_v62 }
 0x9bb   : > { %2129 = vadd.xlane.f32.xlu0 %v2127_v36 }
 0x9bc   : > { %v2122_v63 = vpop.xlane.xlu2 %2121 }
 0x9bd   : > { %v2124_v0 = vmul.f32 %v2122_v63, %v3734_v26 }
 0x9bf   : > { %v2126_v2 = vsub.f32 %v2116_v59, %v2124_v0 }
 0x9c1   : > { %v2128_v4 = vmul.f32 %v2126_v2, %v2126_v2 }
 0x9c3   : > { %2131 = vadd.xlane.f32.xlu1 %v2128_v4 }
 0xa2e   : > { %v2130_v45 = vpop.xlane.xlu0 %2129 }
 0xa2f   : > { %v2133_v5 = vmul.f32 %v2130_v45, %v3734_v26 }
 0xa31   : > { %v2135_v6 = vadd.f32 1e-12, %v2133_v5 }
 0xa33   : > { %3111 = vrsqrt.f32 %v2135_v6  ;;  %vm2143_vm6 = vweird.f32 %v2135_v6 }
 0xa36   : > { %v2132_v46 = vpop.xlane.xlu1 %2131 }
 0xa37   : > { %v2134_v8 = vmul.f32 %v2132_v46, %v3734_v26 }
 0xa39   : > { %v3112_v10 = vpop.eup %3111  ;;  %v2136_v11 = vadd.f32 1e-12, %v2134_v8 }
 0xa3a   : > { %v2138_v12 = vmul.f32 %v3112_v10, %v2135_v6  ;;  %vm2144_vm5 = vweird.f32 %v3112_v10 }
 0xa3b   : > { %3113 = vrsqrt.f32 %v2136_v11  ;;  %vm2145_vm7 = vmor %vm2143_vm6, %vm2144_vm5  ;;  %vm2153_vm10 = vweird.f32 %v2136_v11 }
 0xa3c   : > { %v2139_v14 = vmul.f32 %v3112_v10, %v2138_v12 }
 0xa3e   : > { %v2140_v15 = vmul.f32 0.5, %v2139_v14 }
 0xa40   : > { %v2141_v16 = vsub.f32 1.5, %v2140_v15 }
 0xa41   : > { %v3114_v17 = vpop.eup %3113 }
 0xa42   : > { %v2142_v18 = vmul.f32 %v3112_v10, %v2141_v16  ;;  %v2148_v19 = vmul.f32 %v3114_v17, %v2136_v11  ;;  %vm2154_vm9 = vweird.f32 %v3114_v17 }
 0xa43   : > { %vm2155_vm11 = vmor %vm2153_vm10, %vm2154_vm9 }
 0xa44   : > { %v2146_v26 = vsel %vm2145_vm7, %v3112_v10, %v2142_v18  ;;  %v2149_v21 = vmul.f32 %v3114_v17, %v2148_v19 }
 0xa45   : > { %v2157_v23 = vmul.f32 %v2146_v26, %v2125_v62 }
 0xa46   : > { %v2150_v24 = vmul.f32 0.5, %v2149_v21 }
 0xa47   : > { %v2162_v25 = vmul.f32 %v3063_v20, %v2157_v23 }
 0xa48   : > { %v2151_v1 = vsub.f32 1.5, %v2150_v24 }
 0xa49   : > { %v2167_v27 = vadd.f32 %v3064_v22, %v2162_v25 }
 0xa4a   : > { %v2152_v29 = vmul.f32 %v3114_v17, %v2151_v1 }
 0xa4b   : > { %v2169_v53 = vpack.c.bf16 %v2167_v27, %v2167_v27 }
 0xa4c   : > { %v2156_v30 = vsel %vm2155_vm11, %v3114_v17, %v2152_v29 }
 0xa4d   : > { %v2158_v32 = vmul.f32 %v2156_v30, %v2126_v2 }
 0xa4f   : > { %v2163_v7 = vmul.f32 %v3063_v20, %v2158_v32 }
 0xa51   : > { %v2168_v33 = vadd.f32 %v3064_v22, %v2163_v7  ;;  %2176 = sbr.rel (%p2820_p4) target bundleno = 2812 (0xafc), region = 108 }
 0xa53   : > { %v2170_v3 = vpack.c.bf16 %v2168_v33, %v2168_v33  ;;  %v2957_v34 = vpack.c.bf16 %v2168_v33, %v2167_v27 }
 0xa55   : > { %2958 = vst [vmem:[#allocation2] sm:$0xff] %v2957_v34  }
 0xa56   : > { %v2944_v35 = vld [vmem:[#allocation7 + $0x38] sm:$0xff]  ;;  %v2943_v37 = vld [vmem:[#allocation7 + $0x30] sm:$0xff]  ;;  %v2942_v38 = vld [vmem:[#allocation7 + $0x28] sm:$0xff]  ;;  %v2199_v28 = vunpack.c.l.b16 %v2169_v53  ;;  %v2200_v44 = vunpack.c.l.b16 %v2170_v3 }
 0xa57   : > { %2251 = vmatpush.bf16.msra.mxu0 %v2944_v35  ;;  %v2941_v39 = vld [vmem:[#allocation7 + $0x20] sm:$0xff]  ;;  %v2940_v41 = vld [vmem:[#allocation7 + $0x18] sm:$0xff]  ;;  %v2939_v42 = vld [vmem:[#allocation7 + $0x10] sm:$0xff] }
 0xa58   : > { %v2938_v43 = vld [vmem:[#allocation7 + $0x8] sm:$0xff]  ;;  %v2937_v47 = vld [vmem:[#allocation7] sm:$0xff]  ;;  %v2201_v31 = vpack.c.b16 %v2200_v44, %v2199_v28  ;;  %v3115_v40 = vld [vmem:[%s3961_s10] ss:$0 sm:$0xff] }
 0xa5b   : > { %2252 = vmatpush.bf16.msra.mxu0 %v2943_v37 }
 0xa5f   : > { %2253 = vmatpush.bf16.msra.mxu0 %v2942_v38 }
 0xa63   : > { %2254 = vmatpush.bf16.msra.mxu0 %v2941_v39 }
 0xa67   : > { %2255 = vmatpush.bf16.msra.mxu0 %v2940_v41 }
 0xa6b   : > { %2256 = vmatpush.bf16.msra.mxu0 %v2939_v42 }
 0xa6f   : > { %2257 = vmatpush.bf16.msra.mxu0 %v2938_v43 }
 0xa73   : > { %2258 = vmatpush.bf16.msra.mxu0 %v2937_v47 }
 0xa76   : > { %2259 = vmatmul.bf16.vlgmr.msra.gmra.mxu0 %v2201_v31 }
 0xaf3   : > { %v2260_v48 = vpop.f32.mrf.mxu0 }
 0xaf4   : > { %v2261_v49 = vadd.f32 %v3115_v40, %v2260_v48 }
 0xaf6   : > { %2264 = vst [vmem:[%s834_s27] sm:$0x1] %v2261_v49 }
 0xafb   : > { %v2262_v50 = vpop.f32.mrf.mxu0 }
 0xafc PF: > { %s3963_s21 = sld [smem:[#allocation15_spill]] }
 0xafd   : > { %s3964_s27 = sld [smem:[#allocation11_spill]] }
 0xafe   : > { %s3965_s28 = sld [smem:[#allocation12_spill]] }
 0xaff   : > { %s3966_s29 = sld [smem:[#allocation18_spill]] }
 0xb00   : > { %s3967_s30 = sld [smem:[#allocation13_spill]] }
 0xb01   : > { %s3968_s0 = sld [smem:[#allocation14_spill]] }
 0xb02   : > { %s32_s20 = sadd.s32 1, %s3963_s21   ;;  %s3969_s19 = sld [smem:[#allocation16_spill]] }
 0xb03   : > { %p29_p6 = scmp.ge.s32.totalorder %s32_s20, 6   ;;  %s3970_s1 = sld [smem:[#allocation17_spill]] }
 0xb05   :  { %31 = sbr.rel (!%p29_p6) target bundleno = 25 (0x19), region = 183 }
 0xb0a   :  { %2282 = vsyncpa [#allocation6], 1 }
 0xb0b   :  { %2284 = vsyncpa [#allocation6 + $0x1], 1 }
 0xb0c   :  { %2285 = vsyncpa [#allocation8], 1 }

</bundles_post_ra>
